<compile_context>
chip_gen: v7x
topology: tpu7x:2x2x1
jax: 0.10.0
libtpu: 0.0.40
codegen_flags: <defaults>
</compile_context>

<pallas_src>
import jax
import jax.numpy as jnp
from jax import lax
from jax.experimental import pallas as pl
from jax.experimental.pallas import tpu as pltpu

# ----------------------------- configuration --------------------------------
NUM_SAMPLES = 128             # coarse samples per ray (multiple of 128 -> lane aligned)
NUM_IMPORTANCE_SAMPLES = 128  # fine (importance) samples per ray
NEAR_PLANE = 0.1
FAR_PLANE = 6.0
WHITE_BACKGROUND = True

APP_DIM = 8
NUM_APPEARANCE = 4
D_RAW = 3 + 3 + APP_DIM + 1   # pos + dir + appearance + exposure = 15
D_PAD = 128                   # feature rows zero-padded to a full lane tile
HIDDEN = 128                  # MXU-aligned hidden width of the synthetic field
HEAD = 8                      # row 0 = density, rows 1-3 = rgb, rows 4-7 = zero pad

TN = 512                      # points per MLP grid step (lane axis)
TR = 8                        # rays per render grid step (sublane axis)


# ----------------------------- Pallas kernels --------------------------------
def mlp_kernel(x_ref, w1_ref, w2_ref, b12_ref, wh_ref, bh_ref, out_ref):
    """Synthetic BlockNeRF field, feature-major: x (D_PAD, TN) -> out (HEAD, TN)."""
    x = x_ref[...]                                   # (128, TN)
    b1 = b12_ref[:, 0:1]                             # (128, 1)
    b2 = b12_ref[:, 1:2]
    h = jnp.maximum(
        jnp.dot(w1_ref[...], x, preferred_element_type=jnp.float32) + b1, 0.0)
    h = jnp.maximum(
        jnp.dot(w2_ref[...], h, preferred_element_type=jnp.float32) + b2, 0.0)
    raw = jnp.dot(wh_ref[...], h, preferred_element_type=jnp.float32) + bh_ref[...]
    # row 0 -> softplus (density); rows 1..3 -> sigmoid (rgb); rows 4..7 -> 0
    softplus = jnp.maximum(raw, 0.0) + jnp.log(1.0 + jnp.exp(-jnp.abs(raw)))
    # TODO(synk): on hardware `pl.reciprocal(1+exp(-raw), approx=True)` would move the
    # divide onto the EUP; kept as an exact divide here for bit-stable reference math.
    sigmoid = 1.0 / (1.0 + jnp.exp(-raw))
    row = lax.broadcasted_iota(jnp.int32, raw.shape, 0)
    out_ref[...] = jnp.where(row == 0, softplus,
                             jnp.where(row < 4, sigmoid, 0.0))


def render_kernel(dens_ref, tvals_ref, colors_ref, tri_ref,
                  stats_ref, w_ref, a_ref):
    """Alpha compositing for TR rays x S samples; S is a multiple of 128 (lane dense)."""
    dens = dens_ref[...]                              # (TR, S)
    t = tvals_ref[...]                                # (TR, S)
    # dists computed in-kernel from t_vals (last sample gets the 1e10 far cap)
    diff = t[:, 1:] - t[:, :-1]                       # (TR, S-1)
    last = jnp.full((diff.shape[0], 1), 1e10, jnp.float32)
    dists = jnp.concatenate([diff, last], axis=-1)    # (TR, S)

    x = jnp.maximum(dens * dists, 0.0)
    e = jnp.exp(-x)
    alpha = 1.0 - e                                   # (TR, S)
    log_terms = jnp.log(e + 1e-10)                    # log(1 - alpha + 1e-10)
    # exclusive cumprod in log space via strictly-lower-triangular matmul
    trans = jnp.exp(jnp.dot(log_terms, tri_ref[...],
                            preferred_element_type=jnp.float32))
    w = alpha * trans                                 # (TR, S)
    w_ref[...] = w
    a_ref[...] = alpha

    r = jnp.sum(w * colors_ref[0], axis=-1, keepdims=True)
    g = jnp.sum(w * colors_ref[1], axis=-1, keepdims=True)
    b = jnp.sum(w * colors_ref[2], axis=-1, keepdims=True)
    depth = jnp.sum(w * t, axis=-1, keepdims=True)
    acc = jnp.sum(w, axis=-1, keepdims=True)
    pad = jnp.zeros((w.shape[0], 3), jnp.float32)
    # packed per-ray stats: [r, g, b, depth, acc, 0, 0, 0]  -> (TR, 8)
    stats_ref[...] = jnp.concatenate([r, g, b, depth, acc, pad], axis=-1)


# ----------------------------- kernel wrappers --------------------------------
def run_mlp(x_fm, params):
    """x_fm: (D_PAD, N) feature-major point batch -> (HEAD, N) [density, rgb, pad]."""
    w1t, w2t, b12, wht, bh = params
    dpad, n = x_fm.shape
    assert dpad == D_PAD and n % TN == 0
    flops = 2 * n * (D_PAD * HIDDEN + HIDDEN * HIDDEN + HIDDEN * HEAD)
    bytes_accessed = 4 * (x_fm.size + w1t.size + w2t.size + b12.size
                          + wht.size + bh.size + HEAD * n)
    out = pl.pallas_call(
        mlp_kernel,
        out_shape=jax.ShapeDtypeStruct((HEAD, n), jnp.float32),
        grid=(n // TN,),
        in_specs=[
            pl.BlockSpec((D_PAD, TN), lambda i: (0, i)),
            pl.BlockSpec((HIDDEN, D_PAD), lambda i: (0, 0)),
            pl.BlockSpec((HIDDEN, HIDDEN), lambda i: (0, 0)),
            pl.BlockSpec((HIDDEN, 2), lambda i: (0, 0)),
            pl.BlockSpec((HEAD, HIDDEN), lambda i: (0, 0)),
            pl.BlockSpec((HEAD, 1), lambda i: (0, 0)),
        ],
        out_specs=pl.BlockSpec((HEAD, TN), lambda i: (0, i)),
        compiler_params=pltpu.CompilerParams(dimension_semantics=("parallel",)),
        cost_estimate=pl.CostEstimate(flops=flops, transcendentals=4 * HEAD * n,
                                      bytes_accessed=bytes_accessed),
    )(x_fm, w1t, w2t, b12, wht, bh)
    return out


def run_render(densities, t_vals, colors_cm, tri):
    """densities/t_vals: (R, S); colors_cm: (3, R, S); tri: (S, S) strict lower tri."""
    r, s = densities.shape
    assert r % TR == 0 and s % 128 == 0
    flops = 2 * r * s * s + 16 * r * s
    bytes_accessed = 4 * (5 * r * s + s * s + 2 * r * s + 8 * r)
    stats, weights, alpha = pl.pallas_call(
        render_kernel,
        out_shape=(jax.ShapeDtypeStruct((r, 8), jnp.float32),
                   jax.ShapeDtypeStruct((r, s), jnp.float32),
                   jax.ShapeDtypeStruct((r, s), jnp.float32)),
        grid=(r // TR,),
        in_specs=[
            pl.BlockSpec((TR, s), lambda i: (i, 0)),
            pl.BlockSpec((TR, s), lambda i: (i, 0)),
            pl.BlockSpec((3, TR, s), lambda i: (0, i, 0)),
            pl.BlockSpec((s, s), lambda i: (0, 0)),
        ],
        out_specs=(pl.BlockSpec((TR, 8), lambda i: (i, 0)),
                   pl.BlockSpec((TR, s), lambda i: (i, 0)),
                   pl.BlockSpec((TR, s), lambda i: (i, 0))),
        compiler_params=pltpu.CompilerParams(dimension_semantics=("parallel",)),
        cost_estimate=pl.CostEstimate(flops=flops, transcendentals=3 * r * s,
                                      bytes_accessed=bytes_accessed),
    )(densities, t_vals, colors_cm, tri)
    return stats, weights, alpha


# ----------------------------- JAX glue --------------------------------------
def init_params(key):
    ks = jax.random.split(key, 4)

    def lin_t(k, fan_in, fan_out):     # transposed (out, in) weight
        return jax.random.normal(k, (fan_out, fan_in), jnp.float32) / jnp.sqrt(fan_in)

    w1t = jnp.zeros((HIDDEN, D_PAD), jnp.float32)
    w1t = w1t.at[:, :D_RAW].set(lin_t(ks[0], D_RAW, HIDDEN))
    w2t = lin_t(ks[1], HIDDEN, HIDDEN)
    b12 = jnp.zeros((HIDDEN, 2), jnp.float32)
    wht = jnp.zeros((HEAD, HIDDEN), jnp.float32)
    wht = wht.at[:4, :].set(lin_t(ks[2], HIDDEN, 4))          # density + rgb head
    bh = jnp.zeros((HEAD, 1), jnp.float32).at[0, 0].set(0.1)  # density bias
    app_table = jax.random.normal(ks[3], (NUM_APPEARANCE, APP_DIM), jnp.float32) * 0.1
    return (w1t, w2t, b12, wht, bh), app_table


def build_features_cm(ray_o, ray_d, app_ids, exposure, app_table, t_vals):
    """Channel-major point features (D_PAD, R*S); padded feature rows are zeros."""
    R, S = t_vals.shape
    n = R * S
    pos = ray_o.T[:, :, None] + ray_d.T[:, :, None] * t_vals[None, :, :]   # (3, R, S)
    dirs = jnp.broadcast_to(ray_d.T[:, :, None], (3, R, S))
    app = jnp.broadcast_to(app_table[app_ids].T[:, :, None], (APP_DIM, R, S))
    expo = jnp.broadcast_to(exposure.T[:, :, None], (1, R, S))
    feats = jnp.concatenate([pos, dirs, app, expo], axis=0).reshape(D_RAW, n)
    x_fm = jnp.zeros((D_PAD, n), jnp.float32).at[:D_RAW, :].set(feats)
    return x_fm


def render_pass(params, app_table, ray_o, ray_d, app_ids, exposure, t_vals, tri):
    R, S = t_vals.shape
    x_fm = build_features_cm(ray_o, ray_d, app_ids, exposure, app_table, t_vals)
    out = run_mlp(x_fm, params)                         # (HEAD, R*S), lane-dense
    densities = out[0].reshape(R, S)                    # trivial row-major reshape
    colors_cm = out[1:4].reshape(3, R, S)               # already channel-major
    stats, weights, alpha = run_render(densities, t_vals, colors_cm, tri)
    rgb = stats[:, 0:3]
    depth = stats[:, 3]
    acc = stats[:, 4]
    if WHITE_BACKGROUND:
        rgb = rgb + (1.0 - acc[:, None])
    return rgb, depth, acc, weights, alpha


def hierarchical_sample(t_vals, weights):
    """Deterministic (eval-mode) importance sampling — glue in plain JAX."""
    R, S = weights.shape
    w = weights + 1e-5
    pdf = w / jnp.sum(w, axis=-1, keepdims=True)
    cdf = jnp.cumsum(pdf, axis=-1)
    cdf = jnp.concatenate([jnp.zeros_like(cdf[:, :1]), cdf], axis=-1)     # (R, S+1)

    u = jnp.linspace(0.0, 1.0, NUM_IMPORTANCE_SAMPLES, dtype=jnp.float32)
    u = jnp.broadcast_to(u, (R, NUM_IMPORTANCE_SAMPLES))

    indices = jax.vmap(lambda c, uu: jnp.searchsorted(c, uu, side='right'))(cdf, u)
    below = jnp.clip(indices - 1, 0, cdf.shape[-1] - 1)
    above = jnp.clip(indices, 0, cdf.shape[-1] - 1)

    cdf_below = jnp.take_along_axis(cdf, below, axis=-1)
    cdf_above = jnp.take_along_axis(cdf, above, axis=-1)
    # TODO(synk): PyTorch reference gathers bins from t_vals expanded to S+1 (latent
    # shape bug); here bin indices are clamped to the valid range [0, S-1].
    bins_below = jnp.take_along_axis(t_vals, jnp.clip(below, 0, S - 1), axis=-1)
    bins_above = jnp.take_along_axis(t_vals, jnp.clip(above, 0, S - 1), axis=-1)

    denom = cdf_above - cdf_below
    denom = jnp.where(denom < 1e-5, jnp.ones_like(denom), denom)
    t = (u - cdf_below) / denom
    t_samples = bins_below + t * (bins_above - bins_below)

    t_combined = jnp.sort(jnp.concatenate([t_vals, t_samples], axis=-1), axis=-1)
    return t_combined


def make_tri(S):
    # tri[j, i] = 1 iff j < i  -> dot(log_terms, tri) is the exclusive cumsum
    return (jnp.arange(S)[:, None] < jnp.arange(S)[None, :]).astype(jnp.float32)


def volume_renderer_forward(params, app_table, ray_o, ray_d, app_ids, exposure,
                            near=None, far=None):
    R = ray_o.shape[0]
    if near is None:
        near = jnp.full((R,), NEAR_PLANE, jnp.float32)
    if far is None:
        far = jnp.full((R,), FAR_PLANE, jnp.float32)

    # --- coarse pass (no perturbation: eval mode) ---
    t = jnp.linspace(0.0, 1.0, NUM_SAMPLES, dtype=jnp.float32)
    t_vals = near[:, None] + (far - near)[:, None] * t[None, :]

    tri_c = make_tri(NUM_SAMPLES)
    rgb, depth, acc, weights, alpha = render_pass(
        params, app_table, ray_o, ray_d, app_ids, exposure, t_vals, tri_c)

    result = {'rgb': rgb, 'depth': depth, 'acc': acc,
              'weights': weights, 'alpha': alpha, 't_vals': t_vals}

    # --- fine (hierarchical) pass ---
    if NUM_IMPORTANCE_SAMPLES > 0:
        fine_t = hierarchical_sample(t_vals, weights)
        tri_f = make_tri(NUM_SAMPLES + NUM_IMPORTANCE_SAMPLES)
        f_rgb, f_depth, f_acc, f_w, f_a = render_pass(
            params, app_table, ray_o, ray_d, app_ids, exposure, fine_t, tri_f)
        result.update({'fine_rgb': f_rgb, 'fine_depth': f_depth, 'fine_acc': f_acc,
                       'fine_weights': f_w, 'fine_alpha': f_a, 'fine_t_vals': fine_t})
        result['rgb'] = f_rgb
        result['depth'] = f_depth
        result['acc'] = f_acc
    return result


# ----------------------------- main -------------------------------------------
if __name__ == "__main__":
    key = jax.random.PRNGKey(0)
    k_param, k_o, k_d = jax.random.split(key, 3)

    params, app_table = init_params(k_param)

    R = 32  # rays; coarse points = 4096, fine points = 8192 (both multiples of TN)
    ray_origins = jax.random.normal(k_o, (R, 3), jnp.float32) * 0.1
    ray_directions = jax.random.normal(k_d, (R, 3), jnp.float32)
    ray_directions = ray_directions / jnp.linalg.norm(ray_directions, axis=-1, keepdims=True)
    appearance_ids = jnp.arange(R, dtype=jnp.int32) % NUM_APPEARANCE
    exposure_values = jnp.full((R, 1), 0.5, jnp.float32)

    out = volume_renderer_forward(params, app_table, ray_origins, ray_directions,
                                  appearance_ids, exposure_values)
    jax.block_until_ready(out['rgb'])

    assert out['rgb'].shape == (R, 3)
    assert out['depth'].shape == (R,)
    assert out['acc'].shape == (R,)
    assert out['weights'].shape == (R, NUM_SAMPLES)
    assert out['fine_weights'].shape == (R, NUM_SAMPLES + NUM_IMPORTANCE_SAMPLES)
    assert bool(jnp.all(jnp.isfinite(out['rgb'])))
    assert bool(jnp.all(jnp.isfinite(out['fine_rgb'])))

    print("KERNEL_OK")
</pallas_src>

<mosaic_0001>
module attributes {stable_mosaic.version = 11 : i64} {
  func.func @mlp_kernel(%arg0: i32, %arg1: memref<128x512xf32, #tpu.memory_space<vmem>>, %arg2: memref<128x128xf32, #tpu.memory_space<vmem>>, %arg3: memref<128x128xf32, #tpu.memory_space<vmem>>, %arg4: memref<128x2xf32, #tpu.memory_space<vmem>>, %arg5: memref<8x128xf32, #tpu.memory_space<vmem>>, %arg6: memref<8x1xf32, #tpu.memory_space<vmem>>, %arg7: memref<8x512xf32, #tpu.memory_space<vmem>>) attributes {dimension_semantics = [#tpu.dimension_semantics<parallel>], iteration_bounds = array<i64: 8>, scalar_prefetch = 0 : i64, scratch_operands = 0 : i64, tpu.core_type = #tpu.core_type<tc>, window_params = [{transform_indices = @transform_0, window_bounds = array<i64: 128, 512>}, {pipeline_mode = #tpu.pipeline_mode<synchronous>, transform_indices = @transform_1, window_bounds = array<i64: 128, 128>}, {pipeline_mode = #tpu.pipeline_mode<synchronous>, transform_indices = @transform_2, window_bounds = array<i64: 128, 128>}, {pipeline_mode = #tpu.pipeline_mode<synchronous>, transform_indices = @transform_3, window_bounds = array<i64: 128, 2>}, {pipeline_mode = #tpu.pipeline_mode<synchronous>, transform_indices = @transform_4, window_bounds = array<i64: 8, 128>}, {pipeline_mode = #tpu.pipeline_mode<synchronous>, transform_indices = @transform_5, window_bounds = array<i64: 8, 1>}, {transform_indices = @transform_6, window_bounds = array<i64: 8, 512>}]} {
    %c0 = arith.constant 0 : index
    %c0_0 = arith.constant 0 : index
    %0 = vector.load %arg1[%c0, %c0_0] : memref<128x512xf32, #tpu.memory_space<vmem>>, vector<128x512xf32>
    %c0_1 = arith.constant 0 : index
    %c0_2 = arith.constant 0 : index
    %1 = vector.load %arg4[%c0_1, %c0_2] : memref<128x2xf32, #tpu.memory_space<vmem>>, vector<128x1xf32>
    %c0_3 = arith.constant 0 : index
    %c1 = arith.constant 1 : index
    %2 = vector.load %arg4[%c0_3, %c1] : memref<128x2xf32, #tpu.memory_space<vmem>>, vector<128x1xf32>
    %c0_4 = arith.constant 0 : index
    %c0_5 = arith.constant 0 : index
    %3 = vector.load %arg2[%c0_4, %c0_5] : memref<128x128xf32, #tpu.memory_space<vmem>>, vector<128x128xf32>
    %cst = arith.constant dense<0.000000e+00> : vector<128x512xf32>
    %4 = tpu.matmul %3, %0, %cst {dimension_numbers = #tpu.dot_dimension_numbers<[1], [0], [0], [1], [0, 0, 1, 1], [], []>} : vector<128x128xf32>, vector<128x512xf32>, vector<128x512xf32> -> vector<128x512xf32>
    %5 = vector.broadcast %1 : vector<128x1xf32> to vector<128x512xf32>
    %6 = arith.addf %4, %5 : vector<128x512xf32>
    %cst_6 = arith.constant 0.000000e+00 : f32
    %7 = vector.broadcast %cst_6 : f32 to vector<128x512xf32>
    %8 = arith.maximumf %6, %7 : vector<128x512xf32>
    %c0_7 = arith.constant 0 : index
    %c0_8 = arith.constant 0 : index
    %9 = vector.load %arg3[%c0_7, %c0_8] : memref<128x128xf32, #tpu.memory_space<vmem>>, vector<128x128xf32>
    %cst_9 = arith.constant dense<0.000000e+00> : vector<128x512xf32>
    %10 = tpu.matmul %9, %8, %cst_9 {dimension_numbers = #tpu.dot_dimension_numbers<[1], [0], [0], [1], [0, 0, 1, 1], [], []>} : vector<128x128xf32>, vector<128x512xf32>, vector<128x512xf32> -> vector<128x512xf32>
    %11 = vector.broadcast %2 : vector<128x1xf32> to vector<128x512xf32>
    %12 = arith.addf %10, %11 : vector<128x512xf32>
    %cst_10 = arith.constant 0.000000e+00 : f32
    %13 = vector.broadcast %cst_10 : f32 to vector<128x512xf32>
    %14 = arith.maximumf %12, %13 : vector<128x512xf32>
    %c0_11 = arith.constant 0 : index
    %c0_12 = arith.constant 0 : index
    %15 = vector.load %arg5[%c0_11, %c0_12] : memref<8x128xf32, #tpu.memory_space<vmem>>, vector<8x128xf32>
    %cst_13 = arith.constant dense<0.000000e+00> : vector<8x512xf32>
    %16 = tpu.matmul %15, %14, %cst_13 {dimension_numbers = #tpu.dot_dimension_numbers<[1], [0], [0], [1], [0, 0, 1, 1], [], []>} : vector<8x128xf32>, vector<128x512xf32>, vector<8x512xf32> -> vector<8x512xf32>
    %c0_14 = arith.constant 0 : index
    %c0_15 = arith.constant 0 : index
    %17 = vector.load %arg6[%c0_14, %c0_15] : memref<8x1xf32, #tpu.memory_space<vmem>>, vector<8x1xf32>
    %18 = vector.broadcast %17 : vector<8x1xf32> to vector<8x512xf32>
    %19 = arith.addf %16, %18 : vector<8x512xf32>
    %cst_16 = arith.constant 0.000000e+00 : f32
    %20 = vector.broadcast %cst_16 : f32 to vector<8x512xf32>
    %21 = arith.maximumf %19, %20 : vector<8x512xf32>
    %22 = math.absf %19 : vector<8x512xf32>
    %cst_17 = arith.constant 0.000000e+00 : f32
    %23 = vector.broadcast %cst_17 : f32 to vector<8x512xf32>
    %24 = arith.subf %23, %22 : vector<8x512xf32>
    %25 = math.exp %24 : vector<8x512xf32>
    %cst_18 = arith.constant 1.000000e+00 : f32
    %26 = vector.broadcast %cst_18 : f32 to vector<8x512xf32>
    %27 = arith.addf %26, %25 : vector<8x512xf32>
    %28 = math.log %27 : vector<8x512xf32>
    %29 = arith.addf %21, %28 : vector<8x512xf32>
    %cst_19 = arith.constant 0.000000e+00 : f32
    %30 = vector.broadcast %cst_19 : f32 to vector<8x512xf32>
    %31 = arith.subf %30, %19 : vector<8x512xf32>
    %32 = math.exp %31 : vector<8x512xf32>
    %cst_20 = arith.constant 1.000000e+00 : f32
    %33 = vector.broadcast %cst_20 : f32 to vector<8x512xf32>
    %34 = arith.addf %33, %32 : vector<8x512xf32>
    %cst_21 = arith.constant 1.000000e+00 : f32
    %35 = vector.broadcast %cst_21 : f32 to vector<8x512xf32>
    %36 = arith.divf %35, %34 : vector<8x512xf32>
    %37 = tpu.iota {dimensions = array<i32: 0>} : vector<8x512xi32>
    %c0_i32 = arith.constant 0 : i32
    %38 = vector.broadcast %c0_i32 : i32 to vector<8x512xi32>
    %39 = arith.cmpi eq, %37, %38 : vector<8x512xi32>
    %c4_i32 = arith.constant 4 : i32
    %40 = vector.broadcast %c4_i32 : i32 to vector<8x512xi32>
    %41 = arith.cmpi slt, %37, %40 : vector<8x512xi32>
    %cst_22 = arith.constant 0.000000e+00 : f32
    %42 = vector.broadcast %cst_22 : f32 to vector<8x512xf32>
    %43 = arith.select %41, %36, %42 : vector<8x512xi1>, vector<8x512xf32>
    %44 = arith.select %39, %29, %43 : vector<8x512xi1>, vector<8x512xf32>
    %c0_23 = arith.constant 0 : index
    %c0_24 = arith.constant 0 : index
    %45 = vector.load %arg7[%c0_23, %c0_24] : memref<8x512xf32, #tpu.memory_space<vmem>>, vector<8x512xf32>
    tpu.vector_store %arg7[%c0_23, %c0_24], %44 {strides = array<i32>} : memref<8x512xf32, #tpu.memory_space<vmem>>, vector<8x512xf32>,
    return
  }
  func.func @transform_0(%arg0: i32) -> (i32, i32) {
    %c0_i32 = arith.constant 0 : i32
    %c0_i32_0 = arith.constant 0 : i32
    return %c0_i32, %arg0 : i32, i32
  }
  func.func @transform_1(%arg0: i32) -> (i32, i32) {
    %c0_i32 = arith.constant 0 : i32
    %c0_i32_0 = arith.constant 0 : i32
    %c0_i32_1 = arith.constant 0 : i32
    return %c0_i32, %c0_i32_0 : i32, i32
  }
  func.func @transform_2(%arg0: i32) -> (i32, i32) {
    %c0_i32 = arith.constant 0 : i32
    %c0_i32_0 = arith.constant 0 : i32
    %c0_i32_1 = arith.constant 0 : i32
    return %c0_i32, %c0_i32_0 : i32, i32
  }
  func.func @transform_3(%arg0: i32) -> (i32, i32) {
    %c0_i32 = arith.constant 0 : i32
    %c0_i32_0 = arith.constant 0 : i32
    %c0_i32_1 = arith.constant 0 : i32
    return %c0_i32, %c0_i32_0 : i32, i32
  }
  func.func @transform_4(%arg0: i32) -> (i32, i32) {
    %c0_i32 = arith.constant 0 : i32
    %c0_i32_0 = arith.constant 0 : i32
    %c0_i32_1 = arith.constant 0 : i32
    return %c0_i32, %c0_i32_0 : i32, i32
  }
  func.func @transform_5(%arg0: i32) -> (i32, i32) {
    %c0_i32 = arith.constant 0 : i32
    %c0_i32_0 = arith.constant 0 : i32
    %c0_i32_1 = arith.constant 0 : i32
    return %c0_i32, %c0_i32_0 : i32, i32
  }
  func.func @transform_6(%arg0: i32) -> (i32, i32) {
    %c0_i32 = arith.constant 0 : i32
    %c0_i32_0 = arith.constant 0 : i32
    return %c0_i32, %arg0 : i32, i32
  }
}

</mosaic_0001>

<bundles_post_ra>
// kernel: tpu_custom_call.1
= control target key start
LH: loop header
LB: loop body
LE: loop exit
PB: predicated region body
PF: predicated region fallthrough
CT: control target
= control target key end

     0   :  { %s2780_s0 = inlined_call_operand.hbm [shape: f32[128,4096], index: 0, kind: input, shape index: {}]   ;;  %s2781_s1 = inlined_call_operand.hbm [shape: f32[128,128], index: 1, kind: input, shape index: {}]   ;;  %s2782_s2 = inlined_call_operand.hbm [shape: f32[128,128], index: 2, kind: input, shape index: {}]   ;;  %s2783_s3 = inlined_call_operand.vmem [shape: f32[128,2], index: 3, kind: input, shape index: {}]   ;;  %s2784_s4 = inlined_call_operand.hbm [shape: f32[8,128], index: 4, kind: input, shape index: {}]   ;;  %s2785_s5 = inlined_call_operand.vmem [shape: f32[8,1], index: 5, kind: input, shape index: {}]   ;;  %s2786_s6 = inlined_call_operand.hbm [shape: f32[8,4096], index: 6, kind: output, shape index: {}]  }
   0x1   :  { %2795 = sst [smem:[#allocation18_spill]] %s2781_s1 }
   0x2   :  { %11 = vsyncpa [#allocation3], 0 }
   0x3   :  { %13 = vsyncpa [#allocation3 + $0x1], 0 }
   0x4   :  { %14 = vsyncpa [#allocation6], 0 }
   0x5   :  { %15 = vsyncpa [#allocation9], 0 }
   0x6   :  { %16 = vsyncpa [#allocation4], 0 }
   0x7   :  { %18 = vsyncpa [#allocation4 + $0x1], 0  ;;  %s2256_s21 = smov 0   ;;  %s2258_s22 = smov 0  }
   0x8   :  { %s2260_s23 = smov 0   ;;  %s2262_s24 = smov 0  }
   0x9 LB: > { %s2277_s25 = sadd.s32 4294967295, %s2206_s24   ;;  %s1681_s26 = sadd.s32 4294967294, %s2206_s24   ;;  %s2206_s24 = sphi %s2262_s24, %s2820_s24   ;;  %s2202_s23 = sphi %s2260_s23, %s2824_s23   ;;  %s2198_s22 = sphi %s2258_s22, %s2823_s22   ;;  %s2194_s21 = sphi %s2256_s21, %s2822_s21  }
   0xa   : > { %s2281_s27 = sadd.s32 1, %s2206_s24   ;;  %s31_s28 = sadd.s32 1, %s2202_s23 }
   0xb   : > { %2796 = sst [smem:[#allocation15_spill]] %s2281_s27  ;;  %s28_s29 = ssub.s32 %s2206_s24, %s2281_s27 }
   0xc   : > { %p38_p0 = scmp.ne.s32.totalorder %s2202_s23, %s2198_s22  ;;  %p29_p1 = scmp.eq.s32.totalorder %s28_s29, 0 }
   0xd   : > { %p39_p2 = scmp.eq.s32.totalorder %s2206_s24, 0  ;;  %p44_p3 = scmp.ne.s32.totalorder %s2198_s22, %s2194_s21 }
   0xe   : > { %p2787_p4 = scmp.eq.s32.totalorder %s2277_s25, 0  ;;  %p173_p7 = scmp.eq.s32.totalorder %s2277_s25, 7 }
   0xf   : > { %s2293_s30 = scalar_select %p29_p1, %s2202_s23, %s31_s28  }
  0x10   : > { %p2295_p5 = por %p39_p2, %p38_p0  ;;  %p2301_p6 = por %p2787_p4, %p44_p3 }
  0x11   : > { %2797 = sst [smem:[#allocation16_spill]] %s2293_s30  ;;  %p179_p8 = scmp.eq.s32.totalorder %s1681_s26, 7 }
  0x12   : > { %s2798_s7 = scalar_select %p2295_p5, 1, 0 }
  0x13   : > { %s2799_s8 = scalar_select %p2301_p6, 1, 0 }
  0x14   : > { %p1682_p9 = scmp.ge.s32.totalorder %s2206_s24, 1  ;;  %p186_p10 = scmp.lt.s32.totalorder %s2206_s24, 9 }
  0x15   : > { %p2308_p11 = por %p173_p7, %p38_p0  ;;  %p2312_p12 = por %p179_p8, %p44_p3 }
  0x16   : > { %p2316_p13 = pnand %p1682_p9, %p186_p10  ;;  %s2208_s12 = smov [#allocation5]  }
  0x17   : > { %s2800_s9 = scalar_select %p2308_p11, 1, 0 }
  0x18   : > { %s2801_s10 = scalar_select %p2312_p12, 1, 0 }
  0x19   : > { %s2803_s11 = scalar_select %p2316_p13, 1, 0 }
  0x1a   : > { %2802 = sst [smem:[#allocation17_spill]] %s2801_s10  ;;  %p1911_p1 = pneg %p2316_p13 }
  0x1b   : > { %s198_s13 = sshll.u32 %s2208_s12, 4  ;;  %s2209_s15 = smov [#allocation7]   ;;  %s199_s13 = int_to_ptr.vmem [resolvable:$true] %s198_s13 }
  0x1c   : > { %p2324_p2 = pnand %p1911_p1, %p2787_p4  ;;  %s211_s16 = sshll.u32 %s2209_s15, 4  ;;  %s212_s16 = int_to_ptr.vmem [resolvable:$true] %s211_s16 }
  0x1d   : > { %s2805_s1 = sld [smem:[#allocation18_spill]] }
  0x1e   : > { %p2337_p7 = pneg %p2324_p2 }
  0x23   : > { %s2018_s19 = scalar_lea.hbm %s2805_s1, 2048 }
  0x24   : > { %p2019_p3 = scmp.ne.s32.totalorder %s2805_s1, %s2018_s19  ;;  %p2025_p10 = scmp.lt.u32.totalorder %s2018_s19, %s2805_s1 }
  0x26   : > { %p2021_p8 = pnand %p2337_p7, %p2019_p3 }
  0x28   : > { %p2022_p9 = pneg %p2021_p8 }
  0x2a   : > { %p2027_p1 = pnand %p2025_p10, %p2022_p9 }
  0x2c   : > { %2030 = shalt.err (!%p2027_p1)
}
  0x2d   : > { %s2031_s15 = scalar_lea.vmem %s199_s13, 2048  ;;  %p2039_p11 = scmp.lt.s32.totalorder %s199_s13, %s199_s13 }
  0x2e   : > { %p2032_p4 = scmp.ne.s32.totalorder %s199_s13, %s2031_s15  ;;  %p2040_p6 = scmp.lt.s32.totalorder %s2031_s15, %s2031_s15 }
  0x30   : > { %p2034_p0 = pnand %p2032_p4, %p2337_p7  ;;  %p2041_p13 = por %p2040_p6, %p2039_p11 }
  0x32   : > { %p2035_p12 = pneg %p2034_p0 }
  0x34   : > { %p2042_p5 = pnand %p2041_p13, %p2035_p12 }
  0x36   : > { %2045 = shalt.err (!%p2042_p5)
}
  0x37   : > { %s2210_s17 = smov 128   ;;  %s2211_s18 = smov 8  }
  0x38   : > { %1914 = dma.hbm_to_vmem [thread:$0]  (!%p2324_p2), %s2805_s1, 2048, %s199_s13, [#allocation6], %s2210_s17, %s2210_s17, %s2211_s18  }
  0x39   : > { %p2807_p3 = scmp.ne.s32.totalorder %s2798_s7, 0  ;;  %p2808_p8 = scmp.lt.s32.totalorder %s2206_s24, 8 }
  0x3a   : > { %s2046_s15 = scalar_lea.hbm %s2782_s2, 2048 }
  0x3b   : > { %p2357_p4 = pnand %p2808_p8, %p2807_p3  ;;  %p2047_p5 = scmp.ne.s32.totalorder %s2782_s2, %s2046_s15 }
  0x3c   : > { %p2053_p12 = scmp.lt.u32.totalorder %s2046_s15, %s2782_s2 }
  0x3d   : > { %s2809_s26 = scalar_select %p2357_p4, 1, 0 }
  0x3e   : > { %p2049_p6 = pnand %p2047_p5, %p2337_p7 }
  0x40   : > { %p2050_p11 = pneg %p2049_p6 }
  0x42   : > { %p2055_p13 = pnand %p2053_p12, %p2050_p11 }
  0x44   : > { %2058 = shalt.err (!%p2055_p13)
}
  0x45   : > { %s2059_s7 = scalar_lea.vmem %s212_s16, 2048  ;;  %p2067_p1 = scmp.lt.s32.totalorder %s212_s16, %s212_s16 }
  0x46   : > { %p2060_p0 = scmp.ne.s32.totalorder %s212_s16, %s2059_s7  ;;  %p2068_p3 = scmp.lt.s32.totalorder %s2059_s7, %s2059_s7 }
  0x48   : > { %p2062_p9 = pnand %p2060_p0, %p2337_p7  ;;  %p2069_p8 = por %p2068_p3, %p2067_p1 }
  0x4a   : > { %p2063_p10 = pneg %p2062_p9 }
  0x4c   : > { %p2070_p4 = pnand %p2069_p8, %p2063_p10 }
  0x4e   : > { %2073 = shalt.err (!%p2070_p4)
}
  0x4f   : > { %1917 = dma.hbm_to_vmem [thread:$0]  (!%p2324_p2), %s2782_s2, 2048, %s212_s16, [#allocation6], %s2210_s17, %s2210_s17, %s2211_s18  }
  0x50   : > { %s2212_s20 = smov [#allocation8]   ;;  %s242_s12 = sand.u32 1, %s2202_s23  }
  0x51   : > { %s228_s29 = sshll.u32 %s2212_s20, 4  ;;  %s2074_s13 = scalar_lea.hbm %s2784_s4, 128  ;;  %s229_s29 = int_to_ptr.vmem [resolvable:$true] %s228_s29 }
  0x52   : > { %p2075_p4 = scmp.ne.s32.totalorder %s2784_s4, %s2074_s13  ;;  %p2081_p11 = scmp.lt.u32.totalorder %s2074_s13, %s2784_s4 }
  0x54   : > { %p2077_p5 = pnand %p2075_p4, %p2337_p7 }
  0x56   : > { %p2078_p6 = pneg %p2077_p5 }
  0x58   : > { %p2083_p12 = pnand %p2081_p11, %p2078_p6 }
  0x5a   : > { %2086 = shalt.err (!%p2083_p12)
}
  0x5b   : > { %s2087_s16 = scalar_lea.vmem %s229_s29, 128  ;;  %p2095_p10 = scmp.lt.s32.totalorder %s229_s29, %s229_s29 }
  0x5c   : > { %p2088_p13 = scmp.ne.s32.totalorder %s229_s29, %s2087_s16  ;;  %p2096_p1 = scmp.lt.s32.totalorder %s2087_s16, %s2087_s16 }
  0x5e   : > { %p2090_p0 = pnand %p2088_p13, %p2337_p7  ;;  %p2097_p3 = por %p2096_p1, %p2095_p10 }
  0x60   : > { %p2091_p9 = pneg %p2090_p0 }
  0x62   : > { %p2098_p8 = pnand %p2097_p3, %p2091_p9 }
  0x64   : > { %2101 = shalt.err (!%p2098_p8)
}
  0x65   : > { %1920 = dma.hbm_to_vmem [thread:$0]  (!%p2324_p2), %s2784_s4, 128, %s229_s29, [#allocation9]  }
  0x66   : > { %s1687_s10 = sshll.u32 %s242_s12, 9  ;;  %s1701_s18 = sshll.u32 %s2206_s24, 9 }
  0x67   : > { %s2402_s20 = scalar_lea.hbm %s2780_s0, %s1701_s18  ;;  %s246_s15 = scalar_lea.vmem [#allocation2], %s1687_s10 }
  0x68   : > { %s253_s14 = sshll.u32 %s246_s15, 4  ;;  %s2406_s19 = scalar_lea.sflag [#allocation3], %s242_s12  ;;  %s2404_s14 = int_to_ptr.vmem [resolvable:$true] %s253_s14 }
  0x69   : > { %s2102_s13 = scalar_lea.hbm %s2402_s20, 8192  ;;  %p2810_p2 = scmp.ne.s32.totalorder %s2809_s26, 0 }
  0x6a   : > { %p2103_p7 = scmp.ne.s32.totalorder %s2402_s20, %s2102_s13  ;;  %s2107_s27 = scalar_lea.hbm %s2780_s0, 65536 }
  0x6b   : > { %p2104_p4 = pneg %p2810_p2  ;;  %p2108_p11 = scmp.lt.u32.totalorder %s2402_s20, %s2780_s0 }
  0x6c   : > { %p2109_p12 = scmp.lt.u32.totalorder %s2107_s27, %s2102_s13  ;;  %p2111_p0 = scmp.lt.u32.totalorder %s2102_s13, %s2402_s20 }
  0x6d   : > { %p2105_p5 = pnand %p2104_p4, %p2103_p7 }
  0x6e   : > { %p2110_p13 = por %p2109_p12, %p2108_p11 }
  0x6f   : > { %p2106_p6 = pneg %p2105_p5 }
  0x70   : > { %p2112_p9 = por %p2111_p0, %p2110_p13 }
  0x72   : > { %p2113_p10 = pnand %p2112_p9, %p2106_p6 }
  0x74   : > { %2116 = shalt.err (!%p2113_p10)
}
  0x75   : > { %s2117_s12 = scalar_lea.vmem %s2404_s14, 8192  ;;  %s2213_s17 = smov [#allocation2]  }
  0x76   : > { %p2118_p1 = scmp.ne.s32.totalorder %s2404_s14, %s2117_s12  ;;  %s2122_s10 = sshll.u32 %s2213_s17, 4  ;;  %s2123_s10 = int_to_ptr.vmem [resolvable:$false] %s2122_s10 }
  0x77   : > { %s2124_s18 = scalar_lea.vmem %s2123_s10, 16384  ;;  %p2125_p7 = scmp.lt.s32.totalorder %s2404_s14, %s2123_s10 }
  0x78   : > { %p2120_p3 = pnand %p2118_p1, %p2104_p4  ;;  %p2126_p5 = scmp.lt.s32.totalorder %s2124_s18, %s2117_s12 }
  0x7a   : > { %p2121_p8 = pneg %p2120_p3  ;;  %p2127_p11 = por %p2126_p5, %p2125_p7 }
  0x7c   : > { %p2128_p12 = pnand %p2127_p11, %p2121_p8 }
  0x7e   : > { %2131 = shalt.err (!%p2128_p12)
}
  0x7f   : > { %s2214_s30 = smov 4096   ;;  %s2215_s28 = smov 512  }
  0x80   : > { %s2216_s15 = smov 32   ;;  %p2811_p4 = scmp.ne.s32.totalorder %s2803_s11, 0 }
  0x81   : > { %1924 = dma.hbm_to_vmem [thread:$0]  (!%p2810_p2), %s2402_s20, 8192, %s2404_s14, %s2406_s19, %s2214_s30, %s2215_s28, %s2216_s15  }
  0x82   : > { %265 = sbr.rel (%p2811_p4) target bundleno = 1013 (0x3f5), region = 44  ;;  %s2437_s13 = sand.u32 (!%p2811_p4), 1, %s2198_s22  }
  0x83   : > { %s1691_s29 = sshll.u32 (!%p2811_p4), %s2437_s13, 9  ;;  %s268_s7 = scalar_lea.sflag (!%p2811_p4), [#allocation3], %s2437_s13 }
  0x84   : > { %s2441_s27 = scalar_lea.vmem (!%p2811_p4), [#allocation2], %s1691_s29  ;;  %p2812_p6 = scmp.ne.s32.totalorder (!%p2811_p4), %s2799_s8, 0 }
  0x89   : > { %2177 = dma.done.wait (%p2812_p6), %s268_s7, 8192  }
  0x8a   : > { %2179 = vsyncadd (%p2812_p6), %s268_s7, 4294959104  ;;  %p2813_p2 = scmp.eq.s32.totalorder %s2277_s25, 0 }
  0x8c   : > { %2181 = dma.done.wait (%p2813_p2), [#allocation6], 4096   ;;  %p2814_p13 = pmov %p2813_p2 }
  0x8d   : > { %p2815_p0 = pmov %p2813_p2 }
  0x8e   : > { %2183 = vsyncadd (%p2814_p13), [#allocation6], 4294963200 }
  0x8f   : > { %2185 = dma.done.wait (%p2815_p0), [#allocation9], 128   ;;  %p2816_p9 = pmov %p2815_p0 }
  0x90   : > { %v2217_v0 = vmov 0.0   ;;  %v2218_v1 = vmov 0   ;;  %v315_v2 = vld [vmem:[%s2441_s27 + $0x8] sm:$0xff]  ;;  %v317_v4 = vld [vmem:[%s2441_s27 + $0x18] sm:$0xff]  ;;  %v314_v7 = vld [vmem:[%s2441_s27] sm:$0xff]  ;;  %s1695_s7 = sshll.u32 %s2437_s13, 5 }
  0x91   : > { %2187 = vsyncadd (%p2816_p9), [#allocation9], 4294967168  ;;  %554 = vmatprep.mubr.f32.mxu0 %v2217_v0  ;;  %715 = vmatprep.mubr.f32.mxu1 %v2217_v0  ;;  %v319_v3 = vld [vmem:[%s2441_s27 + $0x28] sm:$0xff]  ;;  %v321_v6 = vld [vmem:[%s2441_s27 + $0x38] sm:$0xff]  ;;  %s311_s8 = scalar_lea.vmem [#allocation10], %s1695_s7  ;;  %p2817_p1 = scmp.ne.s32.totalorder %s2800_s9, 0 }
  0x92   : > { %1980 = vset.pattern.permute.xlu0 %v2218_v1  ;;  %1981 = vset.pattern.permute.xlu1 %v2218_v1  ;;  %v1703_v5 = vpack.c.bf16 %v319_v3, %v315_v2  ;;  %v318_v8 = vld [vmem:[%s2441_s27 + $0x20] sm:$0xff]  ;;  %v1735_v9 = vpack.c.bf16 %v321_v6, %v317_v4  ;;  %v316_v11 = vld [vmem:[%s2441_s27 + $0x10] sm:$0xff]  ;;  %v323_v13 = vld [vmem:[%s2441_s27 + $0x48] sm:$0xff]  ;;  %s1582_s11 = sshll.u32 %s311_s8, 4  ;;  %s2220_s16 = smov [#allocation10]   ;;  %s2738_s11 = int_to_ptr.vmem [resolvable:$true] %s1582_s11 }
  0x93   : > { %v1705_v10 = vpack.c.bf16 %v318_v8, %v314_v7  ;;  %v320_v12 = vld [vmem:[%s2441_s27 + $0x30] sm:$0xff]  ;;  %v327_v15 = vld [vmem:[%s2441_s27 + $0x68] sm:$0xff]  ;;  %v325_v16 = vld [vmem:[%s2441_s27 + $0x58] sm:$0xff]  ;;  %s2132_s19 = scalar_lea.vmem %s2738_s11, 512  ;;  %s2136_s1 = sshll.u32 %s2220_s16, 4  ;;  %s2137_s1 = int_to_ptr.vmem [resolvable:$false] %s2136_s1 }
  0x94   : > { %1704 = vmatprep.subr.bf16.mxu0 %v1703_v5  ;;  %v1737_v14 = vpack.c.bf16 %v320_v12, %v316_v11  ;;  %v329_v17 = vld [vmem:[%s2441_s27 + $0x78] sm:$0xff]  ;;  %1736 = vmatprep.subr.bf16.mxu1 %v1735_v9  ;;  %v1707_v18 = vpack.c.bf16 %v327_v15, %v323_v13  ;;  %v322_v20 = vld [vmem:[%s2441_s27 + $0x40] sm:$0xff]  ;;  %v324_v22 = vld [vmem:[%s2441_s27 + $0x50] sm:$0xff]  ;;  %p2133_p10 = scmp.ne.s32.totalorder %s2738_s11, %s2132_s19  ;;  %s2138_s12 = scalar_lea.vmem %s2137_s1, 1024 }
  0x95   : > { %1706 = vmatpush1.bf16.msra.mxu0 %v1705_v10  ;;  %v1739_v19 = vpack.c.bf16 %v329_v17, %v325_v16  ;;  %v326_v21 = vld [vmem:[%s2441_s27 + $0x60] sm:$0xff]  ;;  %v328_v24 = vld [vmem:[%s2441_s27 + $0x70] sm:$0xff]  ;;  %v331_v25 = vld [vmem:[%s2441_s27 + $0x88] sm:$0xff]  ;;  %p2139_p7 = scmp.lt.s32.totalorder %s2738_s11, %s2137_s1  ;;  %p2140_p5 = scmp.lt.s32.totalorder %s2138_s12, %s2132_s19 }
  0x96   : > { %1738 = vmatpush1.bf16.msra.mxu1 %v1737_v14  ;;  %v1709_v23 = vpack.c.bf16 %v326_v21, %v322_v20  ;;  %v335_v26 = vld [vmem:[%s2441_s27 + $0xa8] sm:$0xff]  ;;  %1708 = vmatprep.subr.bf16.mxu0 %v1707_v18  ;;  %v1741_v27 = vpack.c.bf16 %v328_v24, %v324_v22  ;;  %v333_v29 = vld [vmem:[%s2441_s27 + $0x98] sm:$0xff]  ;;  %v330_v31 = vld [vmem:[%s2441_s27 + $0x80] sm:$0xff]  ;;  %p2134_p3 = pnand %p2133_p10, %p2817_p1 }
  0x97   : > { %1740 = vmatprep.subr.bf16.mxu1 %v1739_v19  ;;  %v1711_v28 = vpack.c.bf16 %v335_v26, %v331_v25  ;;  %v337_v30 = vld [vmem:[%s2441_s27 + $0xb8] sm:$0xff]  ;;  %v334_v33 = vld [vmem:[%s2441_s27 + $0xa0] sm:$0xff]  ;;  %v332_v34 = vld [vmem:[%s2441_s27 + $0x90] sm:$0xff]  ;;  %p2141_p11 = por %p2140_p5, %p2139_p7 }
  0x98   : > { %v1743_v32 = vpack.c.bf16 %v337_v30, %v333_v29  ;;  %v336_v35 = vld [vmem:[%s2441_s27 + $0xb0] sm:$0xff]  ;;  %v1713_v36 = vpack.c.bf16 %v334_v33, %v330_v31  ;;  %v339_v37 = vld [vmem:[%s2441_s27 + $0xc8] sm:$0xff]  ;;  %v341_v39 = vld [vmem:[%s2441_s27 + $0xd8] sm:$0xff]  ;;  %p2135_p8 = pneg %p2134_p3 }
  0x99   : > { %1710 = vmatpush1.bf16.msra.mxu0 %v1709_v23  ;;  %v343_v38 = vld [vmem:[%s2441_s27 + $0xe8] sm:$0xff]  ;;  %v1745_v40 = vpack.c.bf16 %v336_v35, %v332_v34  ;;  %v345_v42 = vld [vmem:[%s2441_s27 + $0xf8] sm:$0xff]  ;;  %v338_v43 = vld [vmem:[%s2441_s27 + $0xc0] sm:$0xff] }
  0x9a   : > { %1742 = vmatpush1.bf16.msra.mxu1 %v1741_v27  ;;  %1712 = vmatprep.subr.bf16.mxu0 %v1711_v28  ;;  %v1715_v41 = vpack.c.bf16 %v343_v38, %v339_v37  ;;  %v342_v44 = vld [vmem:[%s2441_s27 + $0xe0] sm:$0xff]  ;;  %v1747_v45 = vpack.c.bf16 %v345_v42, %v341_v39  ;;  %v340_v46 = vld [vmem:[%s2441_s27 + $0xd0] sm:$0xff]  ;;  %v347_v48 = vld [vmem:[%s2441_s27 + $0x108] sm:$0xff]  ;;  %p2142_p12 = pnand %p2141_p11, %p2135_p8 }
  0x9b   : > { %1744 = vmatprep.subr.bf16.mxu1 %v1743_v32  ;;  %v344_v47 = vld [vmem:[%s2441_s27 + $0xf0] sm:$0xff]  ;;  %v351_v49 = vld [vmem:[%s2441_s27 + $0x128] sm:$0xff]  ;;  %v349_v50 = vld [vmem:[%s2441_s27 + $0x118] sm:$0xff]  ;;  %v1717_v52 = vpack.c.bf16 %v342_v44, %v338_v43 }
  0x9c   : > { %v353_v51 = vld [vmem:[%s2441_s27 + $0x138] sm:$0xff]  ;;  %v1749_v53 = vpack.c.bf16 %v344_v47, %v340_v46  ;;  %v1719_v54 = vpack.c.bf16 %v351_v49, %v347_v48  ;;  %v346_v55 = vld [vmem:[%s2441_s27 + $0x100] sm:$0xff]  ;;  %v348_v57 = vld [vmem:[%s2441_s27 + $0x110] sm:$0xff] }
  0x9d   : > { %1714 = vmatpush1.bf16.msra.mxu0 %v1713_v36  ;;  %v350_v56 = vld [vmem:[%s2441_s27 + $0x120] sm:$0xff]  ;;  %v1751_v58 = vpack.c.bf16 %v353_v51, %v349_v50  ;;  %v352_v59 = vld [vmem:[%s2441_s27 + $0x130] sm:$0xff]  ;;  %v355_v60 = vld [vmem:[%s2441_s27 + $0x148] sm:$0xff] }
  0x9e   : > { %1746 = vmatpush1.bf16.msra.mxu1 %v1745_v40  ;;  %1716 = vmatprep.subr.bf16.mxu0 %v1715_v41  ;;  %v359_v61 = vld [vmem:[%s2441_s27 + $0x168] sm:$0xff]  ;;  %v357_v62 = vld [vmem:[%s2441_s27 + $0x158] sm:$0xff]  ;;  %v1721_v2 = vpack.c.bf16 %v350_v56, %v346_v55  ;;  %v1753_v3 = vpack.c.bf16 %v352_v59, %v348_v57  ;;  %v354_v5 = vld [vmem:[%s2441_s27 + $0x140] sm:$0xff] }
  0x9f   : > { %1748 = vmatprep.subr.bf16.mxu1 %v1747_v45  ;;  %v361_v63 = vld [vmem:[%s2441_s27 + $0x178] sm:$0xff]  ;;  %v1723_v4 = vpack.c.bf16 %v359_v61, %v355_v60  ;;  %v358_v6 = vld [vmem:[%s2441_s27 + $0x160] sm:$0xff]  ;;  %v356_v7 = vld [vmem:[%s2441_s27 + $0x150] sm:$0xff] }
  0xa0   : > { %v1755_v8 = vpack.c.bf16 %v361_v63, %v357_v62  ;;  %v360_v9 = vld [vmem:[%s2441_s27 + $0x170] sm:$0xff]  ;;  %v363_v10 = vld [vmem:[%s2441_s27 + $0x188] sm:$0xff]  ;;  %v365_v12 = vld [vmem:[%s2441_s27 + $0x198] sm:$0xff]  ;;  %v1725_v14 = vpack.c.bf16 %v358_v6, %v354_v5 }
  0xa1   : > { %1718 = vmatpush1.bf16.msra.mxu0 %v1717_v52  ;;  %v367_v11 = vld [vmem:[%s2441_s27 + $0x1a8] sm:$0xff]  ;;  %v369_v13 = vld [vmem:[%s2441_s27 + $0x1b8] sm:$0xff]  ;;  %v1757_v15 = vpack.c.bf16 %v360_v9, %v356_v7  ;;  %v362_v17 = vld [vmem:[%s2441_s27 + $0x180] sm:$0xff] }
  0xa2   : > { %1750 = vmatpush1.bf16.msra.mxu1 %v1749_v53  ;;  %1720 = vmatprep.subr.bf16.mxu0 %v1719_v54  ;;  %v1727_v16 = vpack.c.bf16 %v367_v11, %v363_v10  ;;  %v366_v18 = vld [vmem:[%s2441_s27 + $0x1a0] sm:$0xff]  ;;  %v364_v19 = vld [vmem:[%s2441_s27 + $0x190] sm:$0xff]  ;;  %v1759_v20 = vpack.c.bf16 %v369_v13, %v365_v12  ;;  %v371_v22 = vld [vmem:[%s2441_s27 + $0x1c8] sm:$0xff]  ;;  %v2219_v13 = vmov 1  }
  0xa3   : > { %1752 = vmatprep.subr.bf16.mxu1 %v1751_v58  ;;  %v368_v21 = vld [vmem:[%s2441_s27 + $0x1b0] sm:$0xff]  ;;  %v375_v23 = vld [vmem:[%s2441_s27 + $0x1e8] sm:$0xff]  ;;  %v373_v24 = vld [vmem:[%s2441_s27 + $0x1d8] sm:$0xff]  ;;  %v1729_v26 = vpack.c.bf16 %v366_v18, %v362_v17 }
  0xa4   : > { %v377_v25 = vld [vmem:[%s2441_s27 + $0x1f8] sm:$0xff]  ;;  %v1761_v27 = vpack.c.bf16 %v368_v21, %v364_v19  ;;  %v1731_v28 = vpack.c.bf16 %v375_v23, %v371_v22  ;;  %v370_v29 = vld [vmem:[%s2441_s27 + $0x1c0] sm:$0xff]  ;;  %v372_v32 = vld [vmem:[%s2441_s27 + $0x1d0] sm:$0xff] }
  0xa5   : > { %1722 = vmatpush1.bf16.msra.mxu0 %v1721_v2  ;;  %v374_v30 = vld [vmem:[%s2441_s27 + $0x1e0] sm:$0xff]  ;;  %v1763_v31 = vpack.c.bf16 %v377_v25, %v373_v24  ;;  %v376_v33 = vld [vmem:[%s2441_s27 + $0x1f0] sm:$0xff]  ;;  %v2537_v37 = vld [vmem:[%s2783_s3 + $0x8] sm:$0xff]  ;;  %s1702_s27 = sshll.u32 %s2277_s25, 9  ;;  %s1568_s25 = scalar_lea.sflag [#allocation4], %s2437_s13 }
  0xa6   : > { %1754 = vmatpush1.bf16.msra.mxu1 %v1753_v3  ;;  %1724 = vmatprep.subr.bf16.mxu0 %v1723_v4  ;;  %v2526_v34 = vld [vmem:[%s2783_s3] sm:$0xff]  ;;  %v2532_v35 = vld [vmem:[%s2783_s3 + $0x10] sm:$0xff]  ;;  %v1733_v36 = vpack.c.bf16 %v374_v30, %v370_v29  ;;  %v1765_v38 = vpack.c.bf16 %v376_v33, %v372_v32  ;;  %v2543_v39 = vld [vmem:[%s2783_s3 + $0x18] sm:$0xff]  ;;  %s2736_s14 = scalar_lea.hbm %s2786_s6, %s1702_s27 }
  0xa7   : > { %1756 = vmatprep.subr.bf16.mxu1 %v1755_v8  ;;  %412 = vperm.xlu0 %1980, %v2526_v34   ;;  %v394_v40 = vld [vmem:[#allocation5] sm:$0xff]  ;;  %v2555_v42 = vld [vmem:[%s2783_s3 + $0x28] sm:$0xff]  ;;  %v2562_v44 = vld [vmem:[%s2783_s3 + $0x30] sm:$0xff] }
  0xa8   : > { %422 = vperm.xlu1 %1981, %v2532_v35   ;;  %v2549_v41 = vld [vmem:[%s2783_s3 + $0x20] sm:$0xff]  ;;  %v395_v43 = vld [vmem:[#allocation5 + $0x8] sm:$0xff]  ;;  %v2569_v45 = vld [vmem:[%s2783_s3 + $0x38] sm:$0xff] }
  0xa9   : > { %1726 = vmatpush1.bf16.msra.mxu0 %v1725_v14  ;;  %v396_v46 = vld [vmem:[#allocation5 + $0x10] sm:$0xff]  ;;  %v2576_v47 = vld [vmem:[%s2783_s3 + $0x40] sm:$0xff]  ;;  %v2583_v48 = vld [vmem:[%s2783_s3 + $0x48] sm:$0xff] }
  0xaa   : > { %1758 = vmatpush1.bf16.msra.mxu1 %v1757_v15  ;;  %1728 = vmatprep.subr.bf16.mxu0 %v1727_v16  ;;  %v397_v49 = vld [vmem:[#allocation5 + $0x18] sm:$0xff]  ;;  %v2590_v50 = vld [vmem:[%s2783_s3 + $0x50] sm:$0xff]  ;;  %v398_v52 = vld [vmem:[#allocation5 + $0x20] sm:$0xff] }
  0xab   : > { %1760 = vmatprep.subr.bf16.mxu1 %v1759_v20  ;;  %417 = vperm.xlu0 %1980, %v2537_v37   ;;  %v2597_v51 = vld [vmem:[%s2783_s3 + $0x58] sm:$0xff]  ;;  %v2604_v53 = vld [vmem:[%s2783_s3 + $0x60] sm:$0xff]  ;;  %v2611_v54 = vld [vmem:[%s2783_s3 + $0x68] sm:$0xff] }
  0xac   : > { %427 = vperm.xlu1 %1981, %v2543_v39   ;;  %v399_v55 = vld [vmem:[#allocation5 + $0x28] sm:$0xff]  ;;  %v2618_v56 = vld [vmem:[%s2783_s3 + $0x70] sm:$0xff]  ;;  %v2625_v57 = vld [vmem:[%s2783_s3 + $0x78] sm:$0xff] }
  0xad   : > { %1730 = vmatpush1.bf16.msra.mxu0 %v1729_v26  ;;  %v400_v58 = vld [vmem:[#allocation5 + $0x30] sm:$0xff]  ;;  %v401_v59 = vld [vmem:[#allocation5 + $0x38] sm:$0xff]  ;;  %v402_v60 = vld [vmem:[#allocation5 + $0x40] sm:$0xff] }
  0xae   : > { %1762 = vmatpush1.bf16.msra.mxu1 %v1761_v27  ;;  %1732 = vmatprep.subr.bf16.mxu0 %v1731_v28  ;;  %v403_v61 = vld [vmem:[#allocation5 + $0x48] sm:$0xff]  ;;  %v404_v62 = vld [vmem:[#allocation5 + $0x50] sm:$0xff]  ;;  %v405_v63 = vld [vmem:[#allocation5 + $0x58] sm:$0xff] }
  0xaf   : > { %1764 = vmatprep.subr.bf16.mxu1 %v1763_v31  ;;  %432 = vperm.xlu0 %1980, %v2549_v41   ;;  %v406_v2 = vld [vmem:[#allocation5 + $0x60] sm:$0xff]  ;;  %v407_v3 = vld [vmem:[#allocation5 + $0x68] sm:$0xff]  ;;  %v408_v4 = vld [vmem:[#allocation5 + $0x70] sm:$0xff] }
  0xb0   : > { %437 = vperm.xlu1 %1981, %v2555_v42   ;;  %v409_v5 = vld [vmem:[#allocation5 + $0x78] sm:$0xff] }
  0xb1   : > { %1734 = vmatpush1.bf16.msra.mxu0 %v1733_v36 }
  0xb2   : > { %1766 = vmatpush1.bf16.msra.mxu1 %v1765_v38 }
  0xb3   : > { %442 = vperm.xlu0 %1980, %v2562_v44  }
  0xb4   : > { %555 = vmatmul.mubr.f32.vlgmr.msra.gmra.mrb[0].mxu0 %v394_v40  ;;  %447 = vperm.xlu1 %1981, %v2569_v45  }
  0xb5   : > { %716 = vmatmul.mubr.f32.vlgmr.msra.gmra.mrb[0].mxu1 %v394_v40  ;;  %560 = vmatprep.mubr.f32.mxu0 %v2217_v0 }
  0xb6   : > { %721 = vmatprep.mubr.f32.mxu1 %v2217_v0 }
  0xb7   : > { %452 = vperm.xlu0 %1980, %v2576_v47  }
  0xb8   : > { %561 = vmatmul.mubr.f32.gmra.mrb[2].mxu0 %v395_v43  ;;  %457 = vperm.xlu1 %1981, %v2583_v48  }
  0xb9   : > { %722 = vmatmul.mubr.f32.gmra.mrb[2].mxu1 %v395_v43  ;;  %566 = vmatprep.mubr.f32.mxu0 %v2217_v0 }
  0xba   : > { %727 = vmatprep.mubr.f32.mxu1 %v2217_v0 }
  0xbb   : > { %462 = vperm.xlu0 %1980, %v2590_v50  }
  0xbc   : > { %567 = vmatmul.mubr.f32.gmra.mrb[4].mxu0 %v396_v46  ;;  %467 = vperm.xlu1 %1981, %v2597_v51  }
  0xbd   : > { %728 = vmatmul.mubr.f32.gmra.mrb[4].mxu1 %v396_v46  ;;  %572 = vmatprep.mubr.f32.mxu0 %v2217_v0 }
  0xbe   : > { %733 = vmatprep.mubr.f32.mxu1 %v2217_v0 }
  0xbf   : > { %472 = vperm.xlu0 %1980, %v2604_v53  }
  0xc0   : > { %573 = vmatmul.mubr.f32.gmra.mrb[6].mxu0 %v397_v49  ;;  %477 = vperm.xlu1 %1981, %v2611_v54  }
  0xc1   : > { %734 = vmatmul.mubr.f32.gmra.mrb[6].mxu1 %v397_v49  ;;  %578 = vmatprep.mubr.f32.mxu0 %v2217_v0 }
  0xc2   : > { %739 = vmatprep.mubr.f32.mxu1 %v2217_v0 }
  0xc3   : > { %482 = vperm.xlu0 %1980, %v2618_v56  }
  0xc4   : > { %579 = vmatmul.mubr.f32.gmra.mrb[8].mxu0 %v398_v52  ;;  %487 = vperm.xlu1 %1981, %v2625_v57  }
  0xc5   : > { %740 = vmatmul.mubr.f32.gmra.mrb[8].mxu1 %v398_v52  ;;  %584 = vmatprep.mubr.f32.mxu0 %v2217_v0 }
  0xc6   : > { %745 = vmatprep.mubr.f32.mxu1 %v2217_v0 }
  0xc7   : > { %1982 = vset.pattern.permute.xlu0 %v2219_v13 }
  0xc8   : > { %585 = vmatmul.mubr.f32.gmra.mrb[10].mxu0 %v399_v55  ;;  %1983 = vset.pattern.permute.xlu1 %v2219_v13 }
  0xc9   : > { %746 = vmatmul.mubr.f32.gmra.mrb[10].mxu1 %v399_v55  ;;  %590 = vmatprep.mubr.f32.mxu0 %v2217_v0 }
  0xca   : > { %751 = vmatprep.mubr.f32.mxu1 %v2217_v0  ;;  %897 = vperm.xlu1 %1983, %v2537_v37  }
  0xcb   : > { %893 = vperm.xlu0 %1982, %v2526_v34  }
  0xcc   : > { %591 = vmatmul.mubr.f32.gmra.mrb[12].mxu0 %v400_v58 }
  0xcd   : > { %752 = vmatmul.mubr.f32.gmra.mrb[12].mxu1 %v400_v58  ;;  %596 = vmatprep.mubr.f32.mxu0 %v2217_v0 }
  0xce   : > { %757 = vmatprep.mubr.f32.mxu1 %v2217_v0  ;;  %901 = vperm.xlu1 %1983, %v2532_v35  }
  0xcf   : > { %905 = vperm.xlu0 %1982, %v2543_v39  }
  0xd0   : > { %597 = vmatmul.mubr.f32.gmra.mrb[14].mxu0 %v401_v59 }
  0xd1   : > { %758 = vmatmul.mubr.f32.gmra.mrb[14].mxu1 %v401_v59  ;;  %602 = vmatprep.mubr.f32.mxu0 %v2217_v0 }
  0xd2   : > { %763 = vmatprep.mubr.f32.mxu1 %v2217_v0  ;;  %909 = vperm.xlu1 %1983, %v2549_v41  }
  0xd3   : > { %913 = vperm.xlu0 %1982, %v2555_v42  }
  0xd4   : > { %603 = vmatmul.mubr.f32.gmra.mrb[16].mxu0 %v402_v60 }
  0xd5   : > { %764 = vmatmul.mubr.f32.gmra.mrb[16].mxu1 %v402_v60  ;;  %608 = vmatprep.mubr.f32.mxu0 %v2217_v0 }
  0xd6   : > { %769 = vmatprep.mubr.f32.mxu1 %v2217_v0  ;;  %917 = vperm.xlu1 %1983, %v2562_v44  }
  0xd7   : > { %921 = vperm.xlu0 %1982, %v2569_v45  }
  0xd8   : > { %609 = vmatmul.mubr.f32.gmra.mrb[18].mxu0 %v403_v61 }
  0xd9   : > { %770 = vmatmul.mubr.f32.gmra.mrb[18].mxu1 %v403_v61  ;;  %614 = vmatprep.mubr.f32.mxu0 %v2217_v0 }
  0xda   : > { %775 = vmatprep.mubr.f32.mxu1 %v2217_v0  ;;  %925 = vperm.xlu1 %1983, %v2576_v47  }
  0xdb   : > { %929 = vperm.xlu0 %1982, %v2583_v48  }
  0xdc   : > { %615 = vmatmul.mubr.f32.gmra.mrb[20].mxu0 %v404_v62 }
  0xdd   : > { %776 = vmatmul.mubr.f32.gmra.mrb[20].mxu1 %v404_v62  ;;  %620 = vmatprep.mubr.f32.mxu0 %v2217_v0 }
  0xde   : > { %781 = vmatprep.mubr.f32.mxu1 %v2217_v0  ;;  %933 = vperm.xlu1 %1983, %v2590_v50  }
  0xdf   : > { %937 = vperm.xlu0 %1982, %v2597_v51  }
  0xe0   : > { %621 = vmatmul.mubr.f32.gmra.mrb[22].mxu0 %v405_v63 }
  0xe1   : > { %782 = vmatmul.mubr.f32.gmra.mrb[22].mxu1 %v405_v63  ;;  %626 = vmatprep.mubr.f32.mxu0 %v2217_v0 }
  0xe2   : > { %787 = vmatprep.mubr.f32.mxu1 %v2217_v0  ;;  %941 = vperm.xlu1 %1983, %v2604_v53  }
  0xe3   : > { %945 = vperm.xlu0 %1982, %v2611_v54  }
  0xe4   : > { %627 = vmatmul.mubr.f32.gmra.mrb[24].mxu0 %v406_v2 }
  0xe5   : > { %788 = vmatmul.mubr.f32.gmra.mrb[24].mxu1 %v406_v2  ;;  %632 = vmatprep.mubr.f32.mxu0 %v2217_v0 }
  0xe6   : > { %793 = vmatprep.mubr.f32.mxu1 %v2217_v0  ;;  %949 = vperm.xlu1 %1983, %v2618_v56  }
  0xe7   : > { %953 = vperm.xlu0 %1982, %v2625_v57  }
  0xe8   : > { %633 = vmatmul.mubr.f32.gmra.mrb[26].mxu0 %v407_v3 }
  0xe9   : > { %794 = vmatmul.mubr.f32.gmra.mrb[26].mxu1 %v407_v3  ;;  %638 = vmatprep.mubr.f32.mxu0 %v2217_v0 }
  0xea   : > { %799 = vmatprep.mubr.f32.mxu1 %v2217_v0  ;;  %1984 = vset.pattern.permute.xlu1 %v2218_v1 }
  0xeb   : > { %1985 = vset.pattern.permute.xlu0 %v2218_v1 }
  0xec   : > { %639 = vmatmul.mubr.f32.gmra.mrb[28].mxu0 %v408_v4 }
  0xed   : > { %800 = vmatmul.mubr.f32.gmra.mrb[28].mxu1 %v408_v4  ;;  %644 = vmatprep.mubr.f32.mxu0 %v2217_v0 }
  0xee   : > { %805 = vmatprep.mubr.f32.mxu1 %v2217_v0 }
  0xf0   : > { %645 = vmatmul.mubr.f32.gmra.mrb[30].mxu0 %v409_v5 }
  0xf1   : > { %806 = vmatmul.mubr.f32.gmra.mrb[30].mxu1 %v409_v5  ;;  %1020 = vmatprep.mubr.f32.mxu0 %v2217_v0 }
  0xf2   : > { %1181 = vmatprep.mubr.f32.mxu1 %v2217_v0 }
 0x126   : > { %v413_v6 = vpop.permute.xlu0 %412 }
 0x127   : > { %v423_v21 = vpop.permute.xlu1 %422 }
 0x12a   : > { %v418_v10 = vpop.permute.xlu0 %417 }
 0x12b   : > { %v428_v55 = vpop.permute.xlu1 %427 }
 0x187   : > { %v556_v7 = vpop.f32.mrb[0].mxu0 }
 0x188   : > { %v717_v8 = vpop.f32.mrb[0].mxu1  ;;  %v558_v9 = vpop.f32.mrb[1].mxu0  ;;  %v557_v12 = vadd.f32 %v556_v7, %v413_v6 }
 0x189   : > { %v719_v11 = vpop.f32.mrb[1].mxu1  ;;  %v718_v14 = vadd.f32 %v717_v8, %v413_v6  ;;  %v559_v15 = vadd.f32 %v558_v9, %v413_v6 }
 0x18a   : > { %v720_v17 = vadd.f32 %v719_v11, %v413_v6  ;;  %v812_v25 = vmax.f32 %v557_v12, 0.0 }
 0x18b   : > { %v562_v16 = vpop.f32.mrb[2].mxu0  ;;  %v814_v28 = vmax.f32 %v718_v14, 0.0  ;;  %v813_v29 = vmax.f32 %v559_v15, 0.0 }
 0x18c   : > { %v563_v18 = vadd.f32 %v562_v16, %v418_v10  ;;  %v723_v19 = vpop.f32.mrb[2].mxu1  ;;  %v564_v20 = vpop.f32.mrb[3].mxu0  ;;  %v815_v33 = vmax.f32 %v720_v17, 0.0 }
 0x18d   : > { %v724_v22 = vadd.f32 %v723_v19, %v418_v10  ;;  %v565_v23 = vadd.f32 %v564_v20, %v418_v10  ;;  %v725_v24 = vpop.f32.mrb[3].mxu1  ;;  %v433_v16 = vpop.permute.xlu0 %432 }
 0x18e   : > { %v816_v26 = vmax.f32 %v563_v18, 0.0  ;;  %v726_v27 = vadd.f32 %v725_v24, %v418_v10 }
 0x18f   : > { %v818_v30 = vmax.f32 %v724_v22, 0.0  ;;  %v817_v31 = vmax.f32 %v565_v23, 0.0  ;;  %v568_v32 = vpop.f32.mrb[4].mxu0 }
 0x190   : > { %v1769_v34 = vpack.c.bf16 %v816_v26, %v812_v25  ;;  %v819_v36 = vmax.f32 %v726_v27, 0.0  ;;  %v729_v37 = vpop.f32.mrb[4].mxu1  ;;  %v570_v38 = vpop.f32.mrb[5].mxu0  ;;  %v569_v52 = vadd.f32 %v568_v32, %v423_v21 }
 0x191   : > { %v1801_v40 = vpack.c.bf16 %v818_v30, %v814_v28  ;;  %v1767_v43 = vpack.c.bf16 %v817_v31, %v813_v29  ;;  %v731_v46 = vpop.f32.mrb[5].mxu1  ;;  %v730_v58 = vadd.f32 %v729_v37, %v423_v21  ;;  %v571_v59 = vadd.f32 %v570_v38, %v423_v21 }
 0x192   : > { %v1799_v49 = vpack.c.bf16 %v819_v36, %v815_v33  ;;  %v732_v35 = vadd.f32 %v731_v46, %v423_v21  ;;  %v820_v4 = vmax.f32 %v569_v52, 0.0  ;;  %v438_v21 = vpop.permute.xlu1 %437  ;;  %v443_v52 = vpop.permute.xlu0 %442 }
 0x193   : > { %v574_v60 = vpop.f32.mrb[6].mxu0  ;;  %1768 = vmatprep.subr.bf16.mxu0 %v1767_v43  ;;  %v822_v7 = vmax.f32 %v730_v58, 0.0  ;;  %v821_v8 = vmax.f32 %v571_v59, 0.0 }
 0x194   : > { %v575_v61 = vadd.f32 %v574_v60, %v428_v55  ;;  %v735_v39 = vpop.f32.mrb[6].mxu1  ;;  %1800 = vmatprep.subr.bf16.mxu1 %v1799_v49  ;;  %v576_v62 = vpop.f32.mrb[7].mxu0  ;;  %1770 = vmatpush1.bf16.msra.mxu0 %v1769_v34  ;;  %v823_v11 = vmax.f32 %v732_v35, 0.0 }
 0x195   : > { %v736_v63 = vadd.f32 %v735_v39, %v428_v55  ;;  %v577_v2 = vadd.f32 %v576_v62, %v428_v55  ;;  %v737_v3 = vpop.f32.mrb[7].mxu1  ;;  %1802 = vmatpush1.bf16.msra.mxu1 %v1801_v40 }
 0x196   : > { %v824_v5 = vmax.f32 %v575_v61, 0.0  ;;  %v738_v6 = vadd.f32 %v737_v3, %v428_v55  ;;  %v448_v35 = vpop.permute.xlu1 %447 }
 0x197   : > { %v826_v9 = vmax.f32 %v736_v63, 0.0  ;;  %v825_v10 = vmax.f32 %v577_v2, 0.0  ;;  %v580_v41 = vpop.f32.mrb[8].mxu0 }
 0x198   : > { %v1773_v12 = vpack.c.bf16 %v824_v5, %v820_v4  ;;  %v827_v13 = vmax.f32 %v738_v6, 0.0  ;;  %v741_v14 = vpop.f32.mrb[8].mxu1  ;;  %v582_v15 = vpop.f32.mrb[9].mxu0  ;;  %v581_v20 = vadd.f32 %v580_v41, %v433_v16 }
 0x199   : > { %v1805_v17 = vpack.c.bf16 %v826_v9, %v822_v7  ;;  %v1771_v18 = vpack.c.bf16 %v825_v10, %v821_v8  ;;  %v743_v19 = vpop.f32.mrb[9].mxu1  ;;  %v742_v22 = vadd.f32 %v741_v14, %v433_v16  ;;  %v583_v23 = vadd.f32 %v582_v15, %v433_v16 }
 0x19a   : > { %v1803_v42 = vpack.c.bf16 %v827_v13, %v823_v11  ;;  %v744_v44 = vadd.f32 %v743_v19, %v433_v16  ;;  %v828_v45 = vmax.f32 %v581_v20, 0.0 }
 0x19b   : > { %v586_v24 = vpop.f32.mrb[10].mxu0  ;;  %1772 = vmatprep.subr.bf16.mxu0 %v1771_v18  ;;  %v830_v33 = vmax.f32 %v742_v22, 0.0  ;;  %v829_v34 = vmax.f32 %v583_v23, 0.0 }
 0x19c   : > { %v587_v25 = vadd.f32 %v586_v24, %v438_v21  ;;  %v747_v26 = vpop.f32.mrb[10].mxu1  ;;  %1804 = vmatprep.subr.bf16.mxu1 %v1803_v42  ;;  %v588_v27 = vpop.f32.mrb[11].mxu0  ;;  %1774 = vmatpush1.bf16.msra.mxu0 %v1773_v12  ;;  %v831_v38 = vmax.f32 %v744_v44, 0.0 }
 0x19d   : > { %v748_v28 = vadd.f32 %v747_v26, %v438_v21  ;;  %v589_v29 = vadd.f32 %v588_v27, %v438_v21  ;;  %v749_v30 = vpop.f32.mrb[11].mxu1  ;;  %1806 = vmatpush1.bf16.msra.mxu1 %v1805_v17  ;;  %v453_v17 = vpop.permute.xlu0 %452 }
 0x19e   : > { %v832_v31 = vmax.f32 %v587_v25, 0.0  ;;  %v750_v32 = vadd.f32 %v749_v30, %v438_v21  ;;  %v458_v21 = vpop.permute.xlu1 %457 }
 0x19f   : > { %v834_v36 = vmax.f32 %v748_v28, 0.0  ;;  %v833_v37 = vmax.f32 %v589_v29, 0.0  ;;  %v592_v47 = vpop.f32.mrb[12].mxu0 }
 0x1a0   : > { %v1777_v40 = vpack.c.bf16 %v832_v31, %v828_v45  ;;  %v835_v43 = vmax.f32 %v750_v32, 0.0  ;;  %v753_v46 = vpop.f32.mrb[12].mxu1  ;;  %v594_v49 = vpop.f32.mrb[13].mxu0  ;;  %v593_v60 = vadd.f32 %v592_v47, %v443_v52 }
 0x1a1   : > { %v1809_v55 = vpack.c.bf16 %v834_v36, %v830_v33  ;;  %v1775_v58 = vpack.c.bf16 %v833_v37, %v829_v34  ;;  %v755_v59 = vpop.f32.mrb[13].mxu1  ;;  %v754_v61 = vadd.f32 %v753_v46, %v443_v52  ;;  %v595_v39 = vadd.f32 %v594_v49, %v443_v52  ;;  %v463_v46 = vpop.permute.xlu0 %462 }
 0x1a2   : > { %v1807_v48 = vpack.c.bf16 %v835_v43, %v831_v38  ;;  %v756_v50 = vadd.f32 %v755_v59, %v443_v52  ;;  %v836_v51 = vmax.f32 %v593_v60, 0.0  ;;  %v468_v1 = vpop.permute.xlu1 %467 }
 0x1a3   : > { %v598_v62 = vpop.f32.mrb[14].mxu0  ;;  %1776 = vmatprep.subr.bf16.mxu0 %v1775_v58  ;;  %v838_v9 = vmax.f32 %v754_v61, 0.0  ;;  %v837_v10 = vmax.f32 %v595_v39, 0.0 }
 0x1a4   : > { %v599_v63 = vadd.f32 %v598_v62, %v448_v35  ;;  %v759_v2 = vpop.f32.mrb[14].mxu1  ;;  %1808 = vmatprep.subr.bf16.mxu1 %v1807_v48  ;;  %v600_v3 = vpop.f32.mrb[15].mxu0  ;;  %1778 = vmatpush1.bf16.msra.mxu0 %v1777_v40  ;;  %v839_v12 = vmax.f32 %v756_v50, 0.0 }
 0x1a5   : > { %v760_v4 = vadd.f32 %v759_v2, %v448_v35  ;;  %v601_v5 = vadd.f32 %v600_v3, %v448_v35  ;;  %v761_v6 = vpop.f32.mrb[15].mxu1  ;;  %1810 = vmatpush1.bf16.msra.mxu1 %v1809_v55 }
 0x1a6   : > { %v840_v7 = vmax.f32 %v599_v63, 0.0  ;;  %v762_v8 = vadd.f32 %v761_v6, %v448_v35 }
 0x1a7   : > { %v842_v41 = vmax.f32 %v760_v4, 0.0  ;;  %v841_v11 = vmax.f32 %v601_v5, 0.0  ;;  %v604_v53 = vpop.f32.mrb[16].mxu0 }
 0x1a8   : > { %v1781_v13 = vpack.c.bf16 %v840_v7, %v836_v51  ;;  %v843_v14 = vmax.f32 %v762_v8, 0.0  ;;  %v765_v15 = vpop.f32.mrb[16].mxu1  ;;  %v606_v16 = vpop.f32.mrb[17].mxu0  ;;  %v605_v20 = vadd.f32 %v604_v53, %v453_v17 }
 0x1a9   : > { %v1813_v18 = vpack.c.bf16 %v842_v41, %v838_v9  ;;  %v1779_v19 = vpack.c.bf16 %v841_v11, %v837_v10  ;;  %v767_v42 = vpop.f32.mrb[17].mxu1  ;;  %v766_v22 = vadd.f32 %v765_v15, %v453_v17  ;;  %v607_v23 = vadd.f32 %v606_v16, %v453_v17 }
 0x1aa   : > { %v1811_v54 = vpack.c.bf16 %v843_v14, %v839_v12  ;;  %v768_v56 = vadd.f32 %v767_v42, %v453_v17  ;;  %v844_v57 = vmax.f32 %v605_v20, 0.0  ;;  %v473_v14 = vpop.permute.xlu0 %472  ;;  %v478_v42 = vpop.permute.xlu1 %477 }
 0x1ab   : > { %v610_v24 = vpop.f32.mrb[18].mxu0  ;;  %1780 = vmatprep.subr.bf16.mxu0 %v1779_v19  ;;  %v846_v31 = vmax.f32 %v766_v22, 0.0  ;;  %v845_v32 = vmax.f32 %v607_v23, 0.0 }
 0x1ac   : > { %v611_v44 = vadd.f32 %v610_v24, %v458_v21  ;;  %v771_v25 = vpop.f32.mrb[18].mxu1  ;;  %1812 = vmatprep.subr.bf16.mxu1 %v1811_v54  ;;  %v612_v26 = vpop.f32.mrb[19].mxu0  ;;  %1782 = vmatpush1.bf16.msra.mxu0 %v1781_v13  ;;  %v847_v37 = vmax.f32 %v768_v56, 0.0 }
 0x1ad   : > { %v772_v27 = vadd.f32 %v771_v25, %v458_v21  ;;  %v613_v28 = vadd.f32 %v612_v26, %v458_v21  ;;  %v773_v29 = vpop.f32.mrb[19].mxu1  ;;  %1814 = vmatpush1.bf16.msra.mxu1 %v1813_v18 }
 0x1ae   : > { %v848_v30 = vmax.f32 %v611_v44, 0.0  ;;  %v774_v45 = vadd.f32 %v773_v29, %v458_v21 }
 0x1af   : > { %v850_v33 = vmax.f32 %v772_v27, 0.0  ;;  %v849_v34 = vmax.f32 %v613_v28, 0.0  ;;  %v616_v36 = vpop.f32.mrb[20].mxu0 }
 0x1b0   : > { %v1785_v47 = vpack.c.bf16 %v848_v30, %v844_v57  ;;  %v851_v38 = vmax.f32 %v774_v45, 0.0  ;;  %v777_v40 = vpop.f32.mrb[20].mxu1  ;;  %v618_v43 = vpop.f32.mrb[21].mxu0  ;;  %v617_v59 = vadd.f32 %v616_v36, %v463_v46 }
 0x1b1   : > { %v1817_v49 = vpack.c.bf16 %v850_v33, %v846_v31  ;;  %v1783_v52 = vpack.c.bf16 %v849_v34, %v845_v32  ;;  %v779_v55 = vpop.f32.mrb[21].mxu1  ;;  %v778_v48 = vadd.f32 %v777_v40, %v463_v46  ;;  %v619_v60 = vadd.f32 %v618_v43, %v463_v46 }
 0x1b2   : > { %v1815_v58 = vpack.c.bf16 %v851_v38, %v847_v37  ;;  %v780_v61 = vadd.f32 %v779_v55, %v463_v46  ;;  %v852_v4 = vmax.f32 %v617_v59, 0.0  ;;  %v483_v38 = vpop.permute.xlu0 %482  ;;  %v488_v55 = vpop.permute.xlu1 %487 }
 0x1b3   : > { %v622_v35 = vpop.f32.mrb[22].mxu0  ;;  %1784 = vmatprep.subr.bf16.mxu0 %v1783_v52  ;;  %v854_v51 = vmax.f32 %v778_v48, 0.0  ;;  %v853_v7 = vmax.f32 %v619_v60, 0.0 }
 0x1b4   : > { %v623_v39 = vadd.f32 %v622_v35, %v468_v1  ;;  %v783_v62 = vpop.f32.mrb[22].mxu1  ;;  %1816 = vmatprep.subr.bf16.mxu1 %v1815_v58  ;;  %v624_v50 = vpop.f32.mrb[23].mxu0  ;;  %1786 = vmatpush1.bf16.msra.mxu0 %v1785_v47  ;;  %v855_v41 = vmax.f32 %v780_v61, 0.0 }
 0x1b5   : > { %v784_v63 = vadd.f32 %v783_v62, %v468_v1  ;;  %v625_v2 = vadd.f32 %v624_v50, %v468_v1  ;;  %v785_v3 = vpop.f32.mrb[23].mxu1  ;;  %1818 = vmatpush1.bf16.msra.mxu1 %v1817_v49 }
 0x1b6   : > { %v856_v5 = vmax.f32 %v623_v39, 0.0  ;;  %v786_v6 = vadd.f32 %v785_v3, %v468_v1 }
 0x1b7   : > { %v858_v8 = vmax.f32 %v784_v63, 0.0  ;;  %v857_v9 = vmax.f32 %v625_v2, 0.0  ;;  %v628_v10 = vpop.f32.mrb[24].mxu0 }
 0x1b8   : > { %v1789_v11 = vpack.c.bf16 %v856_v5, %v852_v4  ;;  %v859_v53 = vmax.f32 %v786_v6, 0.0  ;;  %v789_v12 = vpop.f32.mrb[24].mxu1  ;;  %v630_v13 = vpop.f32.mrb[25].mxu0  ;;  %v629_v19 = vadd.f32 %v628_v10, %v473_v14 }
 0x1b9   : > { %v1821_v15 = vpack.c.bf16 %v858_v8, %v854_v51  ;;  %v1787_v16 = vpack.c.bf16 %v857_v9, %v853_v7  ;;  %v791_v17 = vpop.f32.mrb[25].mxu1  ;;  %v790_v54 = vadd.f32 %v789_v12, %v473_v14  ;;  %v631_v20 = vadd.f32 %v630_v13, %v473_v14  ;;  %v877_v12 = vld [vmem:[#allocation7 + $0x8] sm:$0xff]  ;;  %v878_v13 = vld [vmem:[#allocation7 + $0x10] sm:$0xff] }
 0x1ba   : > { %v1819_v18 = vpack.c.bf16 %v859_v53, %v855_v41  ;;  %v792_v22 = vadd.f32 %v791_v17, %v473_v14  ;;  %v860_v27 = vmax.f32 %v629_v19, 0.0  ;;  %v876_v53 = vld [vmem:[#allocation7] sm:$0xff]  ;;  %v879_v14 = vld [vmem:[#allocation7 + $0x18] sm:$0xff]  ;;  %v882_v17 = vld [vmem:[#allocation7 + $0x30] sm:$0xff] }
 0x1bb   : > { %v634_v21 = vpop.f32.mrb[26].mxu0  ;;  %1788 = vmatprep.subr.bf16.mxu0 %v1787_v16  ;;  %v862_v57 = vmax.f32 %v790_v54, 0.0  ;;  %v861_v30 = vmax.f32 %v631_v20, 0.0  ;;  %v881_v16 = vld [vmem:[#allocation7 + $0x28] sm:$0xff]  ;;  %v884_v19 = vld [vmem:[#allocation7 + $0x40] sm:$0xff]  ;;  %v886_v54 = vld [vmem:[#allocation7 + $0x50] sm:$0xff] }
 0x1bc   : > { %v635_v23 = vadd.f32 %v634_v21, %v478_v42  ;;  %v795_v24 = vpop.f32.mrb[26].mxu1  ;;  %1820 = vmatprep.subr.bf16.mxu1 %v1819_v18  ;;  %v636_v56 = vpop.f32.mrb[27].mxu0  ;;  %1790 = vmatpush1.bf16.msra.mxu0 %v1789_v11  ;;  %v863_v33 = vmax.f32 %v792_v22, 0.0  ;;  %v883_v18 = vld [vmem:[#allocation7 + $0x38] sm:$0xff]  ;;  %v888_v21 = vld [vmem:[#allocation7 + $0x60] sm:$0xff]  ;;  %v889_v22 = vld [vmem:[#allocation7 + $0x68] sm:$0xff] }
 0x1bd   : > { %v796_v44 = vadd.f32 %v795_v24, %v478_v42  ;;  %v637_v25 = vadd.f32 %v636_v56, %v478_v42  ;;  %v797_v26 = vpop.f32.mrb[27].mxu1  ;;  %1822 = vmatpush1.bf16.msra.mxu1 %v1821_v15  ;;  %v880_v15 = vld [vmem:[#allocation7 + $0x20] sm:$0xff]  ;;  %v887_v20 = vld [vmem:[#allocation7 + $0x58] sm:$0xff] }
 0x1be   : > { %v864_v28 = vmax.f32 %v635_v23, 0.0  ;;  %v798_v29 = vadd.f32 %v797_v26, %v478_v42  ;;  %v885_v42 = vld [vmem:[#allocation7 + $0x48] sm:$0xff]  ;;  %v890_v23 = vld [vmem:[#allocation7 + $0x70] sm:$0xff]  ;;  %v891_v24 = vld [vmem:[#allocation7 + $0x78] sm:$0xff] }
 0x1bf   : > { %v866_v45 = vmax.f32 %v796_v44, 0.0  ;;  %v865_v31 = vmax.f32 %v637_v25, 0.0  ;;  %v640_v32 = vpop.f32.mrb[28].mxu0  ;;  %v1343_v56 = vld [vmem:[%s2785_s5] sm:$0xff]  ;;  %v894_v44 = vpop.permute.xlu0 %893 }
 0x1c0   : > { %v1793_v34 = vpack.c.bf16 %v864_v28, %v860_v27  ;;  %v867_v36 = vmax.f32 %v798_v29, 0.0  ;;  %v801_v37 = vpop.f32.mrb[28].mxu1  ;;  %v642_v47 = vpop.f32.mrb[29].mxu0  ;;  %v641_v52 = vadd.f32 %v640_v32, %v483_v38  ;;  %1346 = vperm.xlu1 %1984, %v1343_v56  }
 0x1c1   : > { %v1825_v40 = vpack.c.bf16 %v866_v45, %v862_v57  ;;  %v1791_v43 = vpack.c.bf16 %v865_v31, %v861_v30  ;;  %v803_v46 = vpop.f32.mrb[29].mxu1  ;;  %v802_v58 = vadd.f32 %v801_v37, %v483_v38  ;;  %v643_v59 = vadd.f32 %v642_v47, %v483_v38  ;;  %v898_v28 = vpop.permute.xlu1 %897 }
 0x1c2   : > { %v1823_v49 = vpack.c.bf16 %v867_v36, %v863_v33  ;;  %v804_v48 = vadd.f32 %v803_v46, %v483_v38  ;;  %v868_v63 = vmax.f32 %v641_v52, 0.0 }
 0x1c3   : > { %v646_v1 = vpop.f32.mrb[30].mxu0  ;;  %1792 = vmatprep.subr.bf16.mxu0 %v1791_v43  ;;  %v870_v4 = vmax.f32 %v802_v58, 0.0  ;;  %v869_v5 = vmax.f32 %v643_v59, 0.0 }
 0x1c4   : > { %v647_v60 = vadd.f32 %v646_v1, %v488_v55  ;;  %v807_v35 = vpop.f32.mrb[30].mxu1  ;;  %1824 = vmatprep.subr.bf16.mxu1 %v1823_v49  ;;  %v648_v61 = vpop.f32.mrb[31].mxu0  ;;  %1794 = vmatpush1.bf16.msra.mxu0 %v1793_v34  ;;  %v871_v7 = vmax.f32 %v804_v48, 0.0 }
 0x1c5   : > { %v808_v39 = vadd.f32 %v807_v35, %v488_v55  ;;  %v649_v62 = vadd.f32 %v648_v61, %v488_v55  ;;  %v809_v50 = vpop.f32.mrb[31].mxu1  ;;  %1826 = vmatpush1.bf16.msra.mxu1 %v1825_v40  ;;  %v902_v46 = vpop.permute.xlu1 %901 }
 0x1c6   : > { %v872_v2 = vmax.f32 %v647_v60, 0.0  ;;  %v810_v3 = vadd.f32 %v809_v50, %v488_v55 }
 0x1c7   : > { %v874_v6 = vmax.f32 %v808_v39, 0.0  ;;  %v873_v51 = vmax.f32 %v649_v62, 0.0 }
 0x1c8   : > { %v1797_v8 = vpack.c.bf16 %v872_v2, %v868_v63  ;;  %v875_v9 = vmax.f32 %v810_v3, 0.0  ;;  %v906_v3 = vpop.permute.xlu0 %905 }
 0x1c9   : > { %v1829_v10 = vpack.c.bf16 %v874_v6, %v870_v4  ;;  %v1795_v41 = vpack.c.bf16 %v873_v51, %v869_v5 }
 0x1ca   : > { %v1827_v11 = vpack.c.bf16 %v875_v9, %v871_v7 }
 0x1cb   : > { %1796 = vmatprep.subr.bf16.mxu0 %v1795_v41 }
 0x1cc   : > { %1828 = vmatprep.subr.bf16.mxu1 %v1827_v11  ;;  %1798 = vmatpush1.bf16.msra.mxu0 %v1797_v8 }
 0x1cd   : > { %1830 = vmatpush1.bf16.msra.mxu1 %v1829_v10 }
 0x1cf   : > { %1021 = vmatmul.mubr.f32.vlgmr.msra.gmra.mrb[32].mxu0 %v876_v53 }
 0x1d0   : > { %1182 = vmatmul.mubr.f32.vlgmr.msra.gmra.mrb[32].mxu1 %v876_v53  ;;  %1026 = vmatprep.mubr.f32.mxu0 %v2217_v0 }
 0x1d1   : > { %1187 = vmatprep.mubr.f32.mxu1 %v2217_v0 }
 0x1d3   : > { %1027 = vmatmul.mubr.f32.gmra.mrb[34].mxu0 %v877_v12 }
 0x1d4   : > { %1188 = vmatmul.mubr.f32.gmra.mrb[34].mxu1 %v877_v12  ;;  %1032 = vmatprep.mubr.f32.mxu0 %v2217_v0 }
 0x1d5   : > { %1193 = vmatprep.mubr.f32.mxu1 %v2217_v0 }
 0x1d7   : > { %1033 = vmatmul.mubr.f32.gmra.mrb[36].mxu0 %v878_v13 }
 0x1d8   : > { %1194 = vmatmul.mubr.f32.gmra.mrb[36].mxu1 %v878_v13  ;;  %1038 = vmatprep.mubr.f32.mxu0 %v2217_v0 }
 0x1d9   : > { %1199 = vmatprep.mubr.f32.mxu1 %v2217_v0 }
 0x1db   : > { %1039 = vmatmul.mubr.f32.gmra.mrb[38].mxu0 %v879_v14 }
 0x1dc   : > { %1200 = vmatmul.mubr.f32.gmra.mrb[38].mxu1 %v879_v14  ;;  %1044 = vmatprep.mubr.f32.mxu0 %v2217_v0 }
 0x1dd   : > { %1205 = vmatprep.mubr.f32.mxu1 %v2217_v0 }
 0x1df   : > { %1045 = vmatmul.mubr.f32.gmra.mrb[40].mxu0 %v880_v15 }
 0x1e0   : > { %1206 = vmatmul.mubr.f32.gmra.mrb[40].mxu1 %v880_v15  ;;  %1050 = vmatprep.mubr.f32.mxu0 %v2217_v0 }
 0x1e1   : > { %1211 = vmatprep.mubr.f32.mxu1 %v2217_v0 }
 0x1e3   : > { %1051 = vmatmul.mubr.f32.gmra.mrb[42].mxu0 %v881_v16 }
 0x1e4   : > { %1212 = vmatmul.mubr.f32.gmra.mrb[42].mxu1 %v881_v16  ;;  %1056 = vmatprep.mubr.f32.mxu0 %v2217_v0 }
 0x1e5   : > { %1217 = vmatprep.mubr.f32.mxu1 %v2217_v0 }
 0x1e7   : > { %1057 = vmatmul.mubr.f32.gmra.mrb[44].mxu0 %v882_v17 }
 0x1e8   : > { %1218 = vmatmul.mubr.f32.gmra.mrb[44].mxu1 %v882_v17  ;;  %1062 = vmatprep.mubr.f32.mxu0 %v2217_v0 }
 0x1e9   : > { %1223 = vmatprep.mubr.f32.mxu1 %v2217_v0 }
 0x1eb   : > { %1063 = vmatmul.mubr.f32.gmra.mrb[46].mxu0 %v883_v18 }
 0x1ec   : > { %1224 = vmatmul.mubr.f32.gmra.mrb[46].mxu1 %v883_v18  ;;  %1068 = vmatprep.mubr.f32.mxu0 %v2217_v0 }
 0x1ed   : > { %1229 = vmatprep.mubr.f32.mxu1 %v2217_v0 }
 0x1ef   : > { %1069 = vmatmul.mubr.f32.gmra.mrb[48].mxu0 %v884_v19 }
 0x1f0   : > { %1230 = vmatmul.mubr.f32.gmra.mrb[48].mxu1 %v884_v19  ;;  %1074 = vmatprep.mubr.f32.mxu0 %v2217_v0 }
 0x1f1   : > { %1235 = vmatprep.mubr.f32.mxu1 %v2217_v0 }
 0x1f3   : > { %1075 = vmatmul.mubr.f32.gmra.mrb[50].mxu0 %v885_v42 }
 0x1f4   : > { %1236 = vmatmul.mubr.f32.gmra.mrb[50].mxu1 %v885_v42  ;;  %1080 = vmatprep.mubr.f32.mxu0 %v2217_v0 }
 0x1f5   : > { %1241 = vmatprep.mubr.f32.mxu1 %v2217_v0 }
 0x1f7   : > { %1081 = vmatmul.mubr.f32.gmra.mrb[52].mxu0 %v886_v54 }
 0x1f8   : > { %1242 = vmatmul.mubr.f32.gmra.mrb[52].mxu1 %v886_v54  ;;  %1086 = vmatprep.mubr.f32.mxu0 %v2217_v0 }
 0x1f9   : > { %1247 = vmatprep.mubr.f32.mxu1 %v2217_v0 }
 0x1fb   : > { %1087 = vmatmul.mubr.f32.gmra.mrb[54].mxu0 %v887_v20 }
 0x1fc   : > { %1248 = vmatmul.mubr.f32.gmra.mrb[54].mxu1 %v887_v20  ;;  %1092 = vmatprep.mubr.f32.mxu0 %v2217_v0 }
 0x1fd   : > { %1253 = vmatprep.mubr.f32.mxu1 %v2217_v0 }
 0x1ff   : > { %1093 = vmatmul.mubr.f32.gmra.mrb[56].mxu0 %v888_v21 }
 0x200   : > { %1254 = vmatmul.mubr.f32.gmra.mrb[56].mxu1 %v888_v21  ;;  %1098 = vmatprep.mubr.f32.mxu0 %v2217_v0 }
 0x201   : > { %1259 = vmatprep.mubr.f32.mxu1 %v2217_v0 }
 0x203   : > { %1099 = vmatmul.mubr.f32.gmra.mrb[58].mxu0 %v889_v22 }
 0x204   : > { %1260 = vmatmul.mubr.f32.gmra.mrb[58].mxu1 %v889_v22  ;;  %1104 = vmatprep.mubr.f32.mxu0 %v2217_v0  ;;  %v910_v22 = vpop.permute.xlu1 %909 }
 0x205   : > { %1265 = vmatprep.mubr.f32.mxu1 %v2217_v0 }
 0x207   : > { %1105 = vmatmul.mubr.f32.gmra.mrb[60].mxu0 %v890_v23 }
 0x208   : > { %1266 = vmatmul.mubr.f32.gmra.mrb[60].mxu1 %v890_v23  ;;  %1110 = vmatprep.mubr.f32.mxu0 %v2217_v0 }
 0x209   : > { %1271 = vmatprep.mubr.f32.mxu1 %v2217_v0 }
 0x20b   : > { %1111 = vmatmul.mubr.f32.gmra.mrb[62].mxu0 %v891_v24 }
 0x20c   : > { %1272 = vmatmul.mubr.f32.gmra.mrb[62].mxu1 %v891_v24  ;;  %1413 = vmatprep.mubr.f32.mxu0 %v2217_v0 }
 0x20d   : > { %1484 = vmatprep.mubr.f32.mxu1 %v2217_v0 }
 0x2a2   : > { %v1022_v25 = vpop.f32.mrb[32].mxu0 }
 0x2a3   : > { %v1183_v26 = vpop.f32.mrb[32].mxu1  ;;  %v1024_v27 = vpop.f32.mrb[33].mxu0  ;;  %v1023_v57 = vadd.f32 %v1022_v25, %v894_v44 }
 0x2a4   : > { %v1185_v29 = vpop.f32.mrb[33].mxu1  ;;  %v1184_v30 = vadd.f32 %v1183_v26, %v894_v44  ;;  %v1025_v45 = vadd.f32 %v1024_v27, %v894_v44  ;;  %v914_v26 = vpop.permute.xlu0 %913 }
 0x2a5   : > { %v1186_v32 = vadd.f32 %v1185_v29, %v894_v44  ;;  %v1278_v38 = vmax.f32 %v1023_v57, 0.0 }
 0x2a6   : > { %v1028_v31 = vpop.f32.mrb[34].mxu0  ;;  %v1280_v49 = vmax.f32 %v1184_v30, 0.0  ;;  %v1279_v52 = vmax.f32 %v1025_v45, 0.0 }
 0x2a7   : > { %v1029_v33 = vadd.f32 %v1028_v31, %v898_v28  ;;  %v1189_v34 = vpop.f32.mrb[34].mxu1  ;;  %v1030_v36 = vpop.f32.mrb[35].mxu0  ;;  %v1281_v1 = vmax.f32 %v1186_v32, 0.0 }
 0x2a8   : > { %v1190_v0 = vadd.f32 %v1189_v34, %v898_v28  ;;  %v1031_v37 = vadd.f32 %v1030_v36, %v898_v28  ;;  %v1191_v47 = vpop.f32.mrb[35].mxu1 }
 0x2a9   : > { %v1282_v40 = vmax.f32 %v1029_v33, 0.0  ;;  %v1192_v43 = vadd.f32 %v1191_v47, %v898_v28 }
 0x2aa   : > { %v1284_v55 = vmax.f32 %v1190_v0, 0.0  ;;  %v1283_v58 = vmax.f32 %v1031_v37, 0.0  ;;  %v1034_v59 = vpop.f32.mrb[36].mxu0 }
 0x2ab   : > { %v1833_v48 = vpack.c.bf16 %v1282_v40, %v1278_v38  ;;  %v1285_v60 = vmax.f32 %v1192_v43, 0.0  ;;  %v1195_v35 = vpop.f32.mrb[36].mxu1  ;;  %v1036_v61 = vpop.f32.mrb[37].mxu0  ;;  %v1035_v2 = vadd.f32 %v1034_v59, %v902_v46 }
 0x2ac   : > { %v1865_v39 = vpack.c.bf16 %v1284_v55, %v1280_v49  ;;  %v1831_v62 = vpack.c.bf16 %v1283_v58, %v1279_v52  ;;  %v1197_v50 = vpop.f32.mrb[37].mxu1  ;;  %v1196_v4 = vadd.f32 %v1195_v35, %v902_v46  ;;  %v1037_v5 = vadd.f32 %v1036_v61, %v902_v46 }
 0x2ad   : > { %v1863_v63 = vpack.c.bf16 %v1285_v60, %v1281_v1  ;;  %v1198_v51 = vadd.f32 %v1197_v50, %v902_v46  ;;  %v1286_v53 = vmax.f32 %v1035_v2, 0.0  ;;  %v918_v1 = vpop.permute.xlu1 %917 }
 0x2ae   : > { %v1040_v6 = vpop.f32.mrb[38].mxu0  ;;  %1832 = vmatprep.subr.bf16.mxu0 %v1831_v62  ;;  %v1288_v14 = vmax.f32 %v1196_v4, 0.0  ;;  %v1287_v15 = vmax.f32 %v1037_v5, 0.0  ;;  %v922_v62 = vpop.permute.xlu0 %921 }
 0x2af   : > { %v1041_v7 = vadd.f32 %v1040_v6, %v906_v3  ;;  %v1201_v8 = vpop.f32.mrb[38].mxu1  ;;  %1864 = vmatprep.subr.bf16.mxu1 %v1863_v63  ;;  %v1042_v9 = vpop.f32.mrb[39].mxu0  ;;  %1834 = vmatpush1.bf16.msra.mxu0 %v1833_v48  ;;  %v1289_v19 = vmax.f32 %v1198_v51, 0.0 }
 0x2b0   : > { %v1202_v10 = vadd.f32 %v1201_v8, %v906_v3  ;;  %v1043_v41 = vadd.f32 %v1042_v9, %v906_v3  ;;  %v1203_v11 = vpop.f32.mrb[39].mxu1  ;;  %1866 = vmatpush1.bf16.msra.mxu1 %v1865_v39 }
 0x2b1   : > { %v1290_v12 = vmax.f32 %v1041_v7, 0.0  ;;  %v1204_v13 = vadd.f32 %v1203_v11, %v906_v3 }
 0x2b2   : > { %v1292_v16 = vmax.f32 %v1202_v10, 0.0  ;;  %v1291_v17 = vmax.f32 %v1043_v41, 0.0  ;;  %v1046_v18 = vpop.f32.mrb[40].mxu0 }
 0x2b3   : > { %v1837_v42 = vpack.c.bf16 %v1290_v12, %v1286_v53  ;;  %v1293_v54 = vmax.f32 %v1204_v13, 0.0  ;;  %v1207_v20 = vpop.f32.mrb[40].mxu1  ;;  %v1048_v21 = vpop.f32.mrb[41].mxu0  ;;  %v1047_v25 = vadd.f32 %v1046_v18, %v910_v22 }
 0x2b4   : > { %v1869_v23 = vpack.c.bf16 %v1292_v16, %v1288_v14  ;;  %v1835_v24 = vpack.c.bf16 %v1291_v17, %v1287_v15  ;;  %v1209_v56 = vpop.f32.mrb[41].mxu1  ;;  %v1208_v27 = vadd.f32 %v1207_v20, %v910_v22  ;;  %v1049_v28 = vadd.f32 %v1048_v21, %v910_v22 }
 0x2b5   : > { %v1867_v44 = vpack.c.bf16 %v1293_v54, %v1289_v19  ;;  %v1210_v57 = vadd.f32 %v1209_v56, %v910_v22  ;;  %v1294_v36 = vmax.f32 %v1047_v25, 0.0 }
 0x2b6   : > { %v1052_v29 = vpop.f32.mrb[42].mxu0  ;;  %1836 = vmatprep.subr.bf16.mxu0 %v1835_v24  ;;  %v1296_v47 = vmax.f32 %v1208_v27, 0.0  ;;  %v1295_v38 = vmax.f32 %v1049_v28, 0.0  ;;  %v930_v24 = vpop.permute.xlu0 %929 }
 0x2b7   : > { %v1053_v30 = vadd.f32 %v1052_v29, %v914_v26  ;;  %v1213_v45 = vpop.f32.mrb[42].mxu1  ;;  %1868 = vmatprep.subr.bf16.mxu1 %v1867_v44  ;;  %v1054_v31 = vpop.f32.mrb[43].mxu0  ;;  %1838 = vmatpush1.bf16.msra.mxu0 %v1837_v42  ;;  %v1297_v49 = vmax.f32 %v1210_v57, 0.0 }
 0x2b8   : > { %v1214_v32 = vadd.f32 %v1213_v45, %v914_v26  ;;  %v1055_v33 = vadd.f32 %v1054_v31, %v914_v26  ;;  %v1215_v34 = vpop.f32.mrb[43].mxu1  ;;  %1870 = vmatpush1.bf16.msra.mxu1 %v1869_v23  ;;  %v926_v42 = vpop.permute.xlu1 %925 }
 0x2b9   : > { %v1298_v0 = vmax.f32 %v1053_v30, 0.0  ;;  %v1216_v37 = vadd.f32 %v1215_v34, %v914_v26 }
 0x2ba   : > { %v1300_v40 = vmax.f32 %v1214_v32, 0.0  ;;  %v1299_v43 = vmax.f32 %v1055_v33, 0.0  ;;  %v1058_v46 = vpop.f32.mrb[44].mxu0 }
 0x2bb   : > { %v1841_v52 = vpack.c.bf16 %v1298_v0, %v1294_v36  ;;  %v1301_v55 = vmax.f32 %v1216_v37, 0.0  ;;  %v1219_v58 = vpop.f32.mrb[44].mxu1  ;;  %v1060_v59 = vpop.f32.mrb[45].mxu0  ;;  %v1059_v39 = vadd.f32 %v1058_v46, %v918_v1 }
 0x2bc   : > { %v1873_v48 = vpack.c.bf16 %v1300_v40, %v1296_v47  ;;  %v1839_v60 = vpack.c.bf16 %v1299_v43, %v1295_v38  ;;  %v1221_v35 = vpop.f32.mrb[45].mxu1  ;;  %v1220_v50 = vadd.f32 %v1219_v58, %v918_v1  ;;  %v1061_v63 = vadd.f32 %v1060_v59, %v918_v1 }
 0x2bd   : > { %v1871_v61 = vpack.c.bf16 %v1301_v55, %v1297_v49  ;;  %v1222_v3 = vadd.f32 %v1221_v35, %v918_v1  ;;  %v1302_v9 = vmax.f32 %v1059_v39, 0.0 }
 0x2be   : > { %v1064_v2 = vpop.f32.mrb[46].mxu0  ;;  %1840 = vmatprep.subr.bf16.mxu0 %v1839_v60  ;;  %v1304_v11 = vmax.f32 %v1220_v50, 0.0  ;;  %v1303_v53 = vmax.f32 %v1061_v63, 0.0  ;;  %v938_v60 = vpop.permute.xlu0 %937 }
 0x2bf   : > { %v1065_v4 = vadd.f32 %v1064_v2, %v922_v62  ;;  %v1225_v5 = vpop.f32.mrb[46].mxu1  ;;  %1872 = vmatprep.subr.bf16.mxu1 %v1871_v61  ;;  %v1066_v6 = vpop.f32.mrb[47].mxu0  ;;  %1842 = vmatpush1.bf16.msra.mxu0 %v1841_v52  ;;  %v1305_v15 = vmax.f32 %v1222_v3, 0.0 }
 0x2c0   : > { %v1226_v51 = vadd.f32 %v1225_v5, %v922_v62  ;;  %v1067_v7 = vadd.f32 %v1066_v6, %v922_v62  ;;  %v1227_v8 = vpop.f32.mrb[47].mxu1  ;;  %1874 = vmatpush1.bf16.msra.mxu1 %v1873_v48  ;;  %v934_v52 = vpop.permute.xlu1 %933 }
 0x2c1   : > { %v1306_v10 = vmax.f32 %v1065_v4, 0.0  ;;  %v1228_v41 = vadd.f32 %v1227_v8, %v922_v62 }
 0x2c2   : > { %v1308_v12 = vmax.f32 %v1226_v51, 0.0  ;;  %v1307_v13 = vmax.f32 %v1067_v7, 0.0  ;;  %v1070_v14 = vpop.f32.mrb[48].mxu0 }
 0x2c3   : > { %v1845_v16 = vpack.c.bf16 %v1306_v10, %v1302_v9  ;;  %v1309_v17 = vmax.f32 %v1228_v41, 0.0  ;;  %v1231_v18 = vpop.f32.mrb[48].mxu1  ;;  %v1072_v19 = vpop.f32.mrb[49].mxu0  ;;  %v1071_v23 = vadd.f32 %v1070_v14, %v926_v42 }
 0x2c4   : > { %v1877_v54 = vpack.c.bf16 %v1308_v12, %v1304_v11  ;;  %v1843_v20 = vpack.c.bf16 %v1307_v13, %v1303_v53  ;;  %v1233_v21 = vpop.f32.mrb[49].mxu1  ;;  %v1232_v56 = vadd.f32 %v1231_v18, %v926_v42  ;;  %v1073_v44 = vadd.f32 %v1072_v19, %v926_v42 }
 0x2c5   : > { %v1875_v22 = vpack.c.bf16 %v1309_v17, %v1305_v15  ;;  %v1234_v26 = vadd.f32 %v1233_v21, %v926_v42  ;;  %v1310_v31 = vmax.f32 %v1071_v23, 0.0 }
 0x2c6   : > { %v1076_v25 = vpop.f32.mrb[50].mxu0  ;;  %1844 = vmatprep.subr.bf16.mxu0 %v1843_v20  ;;  %v1312_v34 = vmax.f32 %v1232_v56, 0.0  ;;  %v1311_v36 = vmax.f32 %v1073_v44, 0.0  ;;  %v946_v20 = vpop.permute.xlu0 %945 }
 0x2c7   : > { %v1077_v27 = vadd.f32 %v1076_v25, %v930_v24  ;;  %v1237_v28 = vpop.f32.mrb[50].mxu1  ;;  %1876 = vmatprep.subr.bf16.mxu1 %v1875_v22  ;;  %v1078_v29 = vpop.f32.mrb[51].mxu0  ;;  %1846 = vmatpush1.bf16.msra.mxu0 %v1845_v16  ;;  %v1313_v38 = vmax.f32 %v1234_v26, 0.0 }
 0x2c8   : > { %v1238_v57 = vadd.f32 %v1237_v28, %v930_v24  ;;  %v1079_v30 = vadd.f32 %v1078_v29, %v930_v24  ;;  %v1239_v45 = vpop.f32.mrb[51].mxu1  ;;  %1878 = vmatpush1.bf16.msra.mxu1 %v1877_v54  ;;  %v942_v16 = vpop.permute.xlu1 %941 }
 0x2c9   : > { %v1314_v32 = vmax.f32 %v1077_v27, 0.0  ;;  %v1240_v33 = vadd.f32 %v1239_v45, %v930_v24 }
 0x2ca   : > { %v1316_v0 = vmax.f32 %v1238_v57, 0.0  ;;  %v1315_v37 = vmax.f32 %v1079_v30, 0.0  ;;  %v1082_v47 = vpop.f32.mrb[52].mxu0 }
 0x2cb   : > { %v1849_v40 = vpack.c.bf16 %v1314_v32, %v1310_v31  ;;  %v1317_v43 = vmax.f32 %v1240_v33, 0.0  ;;  %v1243_v46 = vpop.f32.mrb[52].mxu1  ;;  %v1084_v49 = vpop.f32.mrb[53].mxu0  ;;  %v1083_v48 = vadd.f32 %v1082_v47, %v934_v52 }
 0x2cc   : > { %v1881_v55 = vpack.c.bf16 %v1316_v0, %v1312_v34  ;;  %v1847_v58 = vpack.c.bf16 %v1315_v37, %v1311_v36  ;;  %v1245_v59 = vpop.f32.mrb[53].mxu1  ;;  %v1244_v35 = vadd.f32 %v1243_v46, %v934_v52  ;;  %v1085_v61 = vadd.f32 %v1084_v49, %v934_v52 }
 0x2cd   : > { %v1879_v1 = vpack.c.bf16 %v1317_v43, %v1313_v38  ;;  %v1246_v62 = vadd.f32 %v1245_v59, %v934_v52  ;;  %v1318_v6 = vmax.f32 %v1083_v48, 0.0 }
 0x2ce   : > { %v1088_v39 = vpop.f32.mrb[54].mxu0  ;;  %1848 = vmatprep.subr.bf16.mxu0 %v1847_v58  ;;  %v1320_v8 = vmax.f32 %v1244_v35, 0.0  ;;  %v1319_v9 = vmax.f32 %v1085_v61, 0.0  ;;  %v954_v58 = vpop.permute.xlu0 %953 }
 0x2cf   : > { %v1089_v50 = vadd.f32 %v1088_v39, %v938_v60  ;;  %v1249_v63 = vpop.f32.mrb[54].mxu1  ;;  %1880 = vmatprep.subr.bf16.mxu1 %v1879_v1  ;;  %v1090_v2 = vpop.f32.mrb[55].mxu0  ;;  %1850 = vmatpush1.bf16.msra.mxu0 %v1849_v40  ;;  %v1321_v53 = vmax.f32 %v1246_v62, 0.0 }
 0x2d0   : > { %v1250_v3 = vadd.f32 %v1249_v63, %v938_v60  ;;  %v1091_v4 = vadd.f32 %v1090_v2, %v938_v60  ;;  %v1251_v5 = vpop.f32.mrb[55].mxu1  ;;  %1882 = vmatpush1.bf16.msra.mxu1 %v1881_v55  ;;  %v950_v40 = vpop.permute.xlu1 %949 }
 0x2d1   : > { %v1322_v51 = vmax.f32 %v1089_v50, 0.0  ;;  %v1252_v7 = vadd.f32 %v1251_v5, %v938_v60 }
 0x2d2   : > { %v1324_v10 = vmax.f32 %v1250_v3, 0.0  ;;  %v1323_v41 = vmax.f32 %v1091_v4, 0.0  ;;  %v1094_v11 = vpop.f32.mrb[56].mxu0 }
 0x2d3   : > { %v1853_v12 = vpack.c.bf16 %v1322_v51, %v1318_v6  ;;  %v1325_v13 = vmax.f32 %v1252_v7, 0.0  ;;  %v1255_v14 = vpop.f32.mrb[56].mxu1  ;;  %v1096_v15 = vpop.f32.mrb[57].mxu0  ;;  %v1095_v54 = vadd.f32 %v1094_v11, %v942_v16 }
 0x2d4   : > { %v1885_v17 = vpack.c.bf16 %v1324_v10, %v1320_v8  ;;  %v1851_v18 = vpack.c.bf16 %v1323_v41, %v1319_v9  ;;  %v1257_v19 = vpop.f32.mrb[57].mxu1  ;;  %v1256_v21 = vadd.f32 %v1255_v14, %v942_v16  ;;  %v1097_v22 = vadd.f32 %v1096_v15, %v942_v16 }
 0x2d5   : > { %v1883_v42 = vpack.c.bf16 %v1325_v13, %v1321_v53  ;;  %v1258_v24 = vadd.f32 %v1257_v19, %v942_v16  ;;  %v1326_v29 = vmax.f32 %v1095_v54, 0.0  ;;  %v1347_v13 = vpop.permute.xlu1 %1346 }
 0x2d6   : > { %v1100_v23 = vpop.f32.mrb[58].mxu0  ;;  %1852 = vmatprep.subr.bf16.mxu0 %v1851_v18  ;;  %v1328_v45 = vmax.f32 %v1256_v21, 0.0  ;;  %v1327_v31 = vmax.f32 %v1097_v22, 0.0 }
 0x2d7   : > { %v1101_v56 = vadd.f32 %v1100_v23, %v946_v20  ;;  %v1261_v44 = vpop.f32.mrb[58].mxu1  ;;  %1884 = vmatprep.subr.bf16.mxu1 %v1883_v42  ;;  %v1102_v25 = vpop.f32.mrb[59].mxu0  ;;  %1854 = vmatpush1.bf16.msra.mxu0 %v1853_v12  ;;  %v1329_v36 = vmax.f32 %v1258_v24, 0.0  ;;  %v1342_v12 = vld [vmem:[#allocation8] sm:$0xff] }
 0x2d8   : > { %v1262_v26 = vadd.f32 %v1261_v44, %v946_v20  ;;  %v1103_v27 = vadd.f32 %v1102_v25, %v946_v20  ;;  %v1263_v28 = vpop.f32.mrb[59].mxu1  ;;  %1886 = vmatpush1.bf16.msra.mxu1 %v1885_v17 }
 0x2d9   : > { %v1330_v57 = vmax.f32 %v1101_v56, 0.0  ;;  %v1264_v30 = vadd.f32 %v1263_v28, %v946_v20 }
 0x2da   : > { %v1332_v32 = vmax.f32 %v1262_v26, 0.0  ;;  %v1331_v33 = vmax.f32 %v1103_v27, 0.0  ;;  %v1106_v34 = vpop.f32.mrb[60].mxu0 }
 0x2db   : > { %v1857_v0 = vpack.c.bf16 %v1330_v57, %v1326_v29  ;;  %v1333_v37 = vmax.f32 %v1264_v30, 0.0  ;;  %v1267_v47 = vpop.f32.mrb[60].mxu1  ;;  %v1108_v38 = vpop.f32.mrb[61].mxu0  ;;  %v1107_v55 = vadd.f32 %v1106_v34, %v950_v40 }
 0x2dc   : > { %v1889_v43 = vpack.c.bf16 %v1332_v32, %v1328_v45  ;;  %v1855_v46 = vpack.c.bf16 %v1331_v33, %v1327_v31  ;;  %v1269_v49 = vpop.f32.mrb[61].mxu1  ;;  %v1268_v59 = vadd.f32 %v1267_v47, %v950_v40  ;;  %v1109_v1 = vadd.f32 %v1108_v38, %v950_v40 }
 0x2dd   : > { %v1887_v52 = vpack.c.bf16 %v1333_v37, %v1329_v36  ;;  %v1270_v60 = vadd.f32 %v1269_v49, %v950_v40  ;;  %v1334_v2 = vmax.f32 %v1107_v55, 0.0 }
 0x2de   : > { %v1112_v48 = vpop.f32.mrb[62].mxu0  ;;  %1856 = vmatprep.subr.bf16.mxu0 %v1855_v46  ;;  %v1336_v5 = vmax.f32 %v1268_v59, 0.0  ;;  %v1335_v6 = vmax.f32 %v1109_v1, 0.0 }
 0x2df   : > { %v1113_v35 = vadd.f32 %v1112_v48, %v954_v58  ;;  %v1273_v61 = vpop.f32.mrb[62].mxu1  ;;  %1888 = vmatprep.subr.bf16.mxu1 %v1887_v52  ;;  %v1114_v39 = vpop.f32.mrb[63].mxu0  ;;  %1858 = vmatpush1.bf16.msra.mxu0 %v1857_v0  ;;  %v1337_v8 = vmax.f32 %v1270_v60, 0.0 }
 0x2e0   : > { %v1274_v62 = vadd.f32 %v1273_v61, %v954_v58  ;;  %v1115_v50 = vadd.f32 %v1114_v39, %v954_v58  ;;  %v1275_v63 = vpop.f32.mrb[63].mxu1  ;;  %1890 = vmatpush1.bf16.msra.mxu1 %v1889_v43 }
 0x2e1   : > { %v1338_v3 = vmax.f32 %v1113_v35, 0.0  ;;  %v1276_v4 = vadd.f32 %v1275_v63, %v954_v58  ;;  %v1551_v35 = vlaneseq }
 0x2e2   : > { %v1340_v51 = vmax.f32 %v1274_v62, 0.0  ;;  %v1339_v7 = vmax.f32 %v1115_v50, 0.0 }
 0x2e3   : > { %v1861_v9 = vpack.c.bf16 %v1338_v3, %v1334_v2  ;;  %v1341_v10 = vmax.f32 %v1276_v4, 0.0  ;;  %v1552_v39 = vshrl.u32 %v1551_v35, 7 }
 0x2e4   : > { %v1893_v41 = vpack.c.bf16 %v1340_v51, %v1336_v5  ;;  %v1859_v11 = vpack.c.bf16 %v1339_v7, %v1335_v6 }
 0x2e5   : > { %v1891_v53 = vpack.c.bf16 %v1341_v10, %v1337_v8  ;;  %vm1554_vm0 = vcmp.lt.s32.totalorder %v1552_v39, 4  ;;  %vm1553_vm1 = vcmp.eq.s32.totalorder %v1552_v39, 0 }
 0x2e6   : > { %1860 = vmatprep.subr.bf16.mxu0 %v1859_v11 }
 0x2e7   : > { %1892 = vmatprep.subr.bf16.mxu1 %v1891_v53  ;;  %1862 = vmatpush1.bf16.msra.mxu0 %v1861_v9 }
 0x2e8   : > { %1894 = vmatpush1.bf16.msra.mxu1 %v1893_v41 }
 0x2ea   : > { %1414 = vmatmul.mubr.f32.vlgmr.msra.gmra.mrb[64].mxu0 %v1342_v12 }
 0x2eb   : > { %1485 = vmatmul.mubr.f32.vlgmr.msra.gmra.mrb[64].mxu1 %v1342_v12 }
 0x3bd   : > { %v1415_v14 = vpop.f32.mrb[64].mxu0 }
 0x3be   : > { %v2704_v15 = vadd.f32 %v1415_v14, %v1347_v13  ;;  %v1486_v16 = vpop.f32.mrb[64].mxu1  ;;  %v1417_v17 = vpop.f32.mrb[65].mxu0 }
 0x3bf   : > { %v2706_v18 = vadd.f32 %v1486_v16, %v1347_v13  ;;  %v2708_v19 = vadd.f32 %v1417_v17, %v1347_v13  ;;  %v1488_v42 = vpop.f32.mrb[65].mxu1 }
 0x3c0   : > { %v1495_v54 = vand.u32 2147483647, %v2704_v15  ;;  %v1527_v20 = vsub.f32 0.0, %v2704_v15  ;;  %v2712_v21 = vadd.f32 %v1488_v42, %v1347_v13  ;;  %v1491_v3 = vmax.f32 %v2704_v15, 0.0 }
 0x3c1   : > { %v1497_v22 = vand.u32 2147483647, %v2706_v18  ;;  %v1529_v23 = vsub.f32 0.0, %v2706_v18  ;;  %v1496_v44 = vand.u32 2147483647, %v2708_v19  ;;  %v1528_v25 = vsub.f32 0.0, %v2708_v19 }
 0x3c2   : > { %v1499_v24 = vsub.f32 0.0, %v1495_v54  ;;  %v1531_v56 = vmul.f32 1.442695, %v1527_v20  ;;  %v1498_v28 = vand.u32 2147483647, %v2712_v21  ;;  %v1530_v32 = vsub.f32 0.0, %v2712_v21 }
 0x3c3   : > { %v1501_v26 = vsub.f32 0.0, %v1497_v22  ;;  %v1535_v27 = vmul.f32 1.442695, %v1529_v23  ;;  %v1500_v57 = vsub.f32 0.0, %v1496_v44  ;;  %v1533_v30 = vmul.f32 1.442695, %v1528_v25 }
 0x3c4   : > { %v1503_v29 = vmul.f32 1.442695, %v1499_v24  ;;  %1986 = vpow2.f32 %v1531_v56  ;;  %v1502_v31 = vsub.f32 0.0, %v1498_v28  ;;  %v1537_v36 = vmul.f32 1.442695, %v1530_v32 }
 0x3c5   : > { %v1507_v45 = vmul.f32 1.442695, %v1501_v26  ;;  %1988 = vpow2.f32 %v1535_v27  ;;  %v1505_v33 = vmul.f32 1.442695, %v1500_v57  ;;  %v1493_v6 = vmax.f32 %v2706_v18, 0.0 }
 0x3c6   : > { %1990 = vpow2.f32 %v1503_v29  ;;  %v1509_v34 = vmul.f32 1.442695, %v1502_v31  ;;  %v1492_v9 = vmax.f32 %v2708_v19, 0.0  ;;  %v1494_v12 = vmax.f32 %v2712_v21, 0.0 }
 0x3c7   : > { %1992 = vpow2.f32 %v1507_v45 }
 0x3c8   : > { %1994 = vpow2.f32 %v1505_v33 }
 0x3c9   : > { %1996 = vpow2.f32 %v1533_v30 }
 0x3ca   : > { %1998 = vpow2.f32 %v1509_v34 }
 0x3cb   : > { %2000 = vpow2.f32 %v1537_v36 }
 0x3ce   : > { %v1987_v0 = vpop.eup %1986 }
 0x3cf   : > { %v1989_v37 = vpop.eup %1988  ;;  %v1539_v47 = vadd.f32 1.0, %v1987_v0 }
 0x3d0   : > { %v1991_v38 = vpop.eup %1990  ;;  %v1541_v40 = vadd.f32 1.0, %v1989_v37 }
 0x3d1   : > { %v1993_v43 = vpop.eup %1992  ;;  %v1511_v46 = vadd.f32 1.0, %v1991_v38  ;;  %2002 = vrcp.f32 %v1539_v47 }
 0x3d2   : > { %v1995_v49 = vpop.eup %1994  ;;  %v1513_v52 = vadd.f32 1.0, %v1993_v43  ;;  %2004 = vrcp.f32 %v1541_v40 }
 0x3d3   : > { %v1997_v55 = vpop.eup %1996  ;;  %2006 = vlog2.f32 %v1511_v46  ;;  %v1512_v58 = vadd.f32 1.0, %v1995_v49 }
 0x3d4   : > { %v1999_v59 = vpop.eup %1998  ;;  %2008 = vlog2.f32 %v1513_v52  ;;  %v1540_v1 = vadd.f32 1.0, %v1997_v55 }
 0x3d5   : > { %v2001_v48 = vpop.eup %2000  ;;  %2010 = vlog2.f32 %v1512_v58  ;;  %v1514_v60 = vadd.f32 1.0, %v1999_v59 }
 0x3d6   : > { %2012 = vrcp.f32 %v1540_v1  ;;  %v1542_v61 = vadd.f32 1.0, %v2001_v48 }
 0x3d7   : > { %2014 = vlog2.f32 %v1514_v60 }
 0x3d8   : > { %2016 = vrcp.f32 %v1542_v61 }
 0x3db   : > { %v2003_v62 = vpop.eup %2002 }
 0x3dc   : > { %v2005_v50 = vpop.eup %2004  ;;  %v1555_v11 = vsel %vm1554_vm0, %v2003_v62, 0.0 }
 0x3dd   : > { %v2007_v63 = vpop.eup %2006  ;;  %v1557_v15 = vsel %vm1554_vm0, %v2005_v50, 0.0 }
 0x3de   : > { %v2009_v2 = vpop.eup %2008  ;;  %v1516_v4 = vmul.f32 0.6931472, %v2007_v63 }
 0x3df   : > { %v2011_v5 = vpop.eup %2010  ;;  %v1520_v51 = vmul.f32 0.6931472, %v2009_v2 }
 0x3e0   : > { %v2013_v7 = vpop.eup %2012  ;;  %v1523_v8 = vadd.f32 %v1516_v4, %v1491_v3  ;;  %v1518_v10 = vmul.f32 0.6931472, %v2011_v5 }
 0x3e1   : > { %v2015_v41 = vpop.eup %2014  ;;  %v1525_v53 = vadd.f32 %v1520_v51, %v1493_v6  ;;  %v1556_v19 = vsel %vm1554_vm0, %v2013_v7, 0.0 }
 0x3e2   : > { %v2017_v13 = vpop.eup %2016  ;;  %v1559_v14 = vsel %vm1553_vm1, %v1523_v8, %v1555_v11  ;;  %v1524_v16 = vadd.f32 %v1518_v10, %v1492_v9  ;;  %v1522_v17 = vmul.f32 0.6931472, %v2015_v41 }
 0x3e3   : > { %1563 = vst [vmem:[%s311_s8] sm:$0xff] %v1559_v14  ;;  %v1561_v18 = vsel %vm1553_vm1, %v1525_v53, %v1557_v15  ;;  %v1558_v20 = vsel %vm1554_vm0, %v2017_v13, 0.0 }
 0x3e4   : > { %1565 = vst [vmem:[%s311_s8 + $0x10] sm:$0xff] %v1561_v18  ;;  %v1560_v42 = vsel %vm1553_vm1, %v1524_v16, %v1556_v19  ;;  %v1526_v54 = vadd.f32 %v1522_v17, %v1494_v12 }
 0x3e5   : > { %1564 = vst [vmem:[%s311_s8 + $0x8] sm:$0xff] %v1560_v42 }
 0x3e6   : > { %v1562_v21 = vsel %vm1553_vm1, %v1526_v54, %v1558_v20 }
 0x3e7   : > { %1566 = vst [vmem:[%s311_s8 + $0x18] sm:$0xff] %v1562_v21 }
 0x3e8   : > { %2145 = shalt.err (!%p2142_p12)
}
 0x3e9   : > { %s2146_s13 = scalar_lea.hbm %s2736_s14, 512  ;;  %s2150_s18 = scalar_lea.hbm %s2786_s6, 4096 }
 0x3ea   : > { %p2147_p4 = scmp.ne.s32.totalorder %s2736_s14, %s2146_s13  ;;  %p2151_p13 = scmp.lt.u32.totalorder %s2736_s14, %s2786_s6 }
 0x3eb   : > { %p2152_p0 = scmp.lt.u32.totalorder %s2150_s18, %s2146_s13  ;;  %p2154_p10 = scmp.lt.u32.totalorder %s2146_s13, %s2736_s14 }
 0x3ec   : > { %p2148_p6 = pnand %p2147_p4, %p2817_p1 }
 0x3ed   : > { %p2153_p9 = por %p2152_p0, %p2151_p13 }
 0x3ee   : > { %p2149_p2 = pneg %p2148_p6 }
 0x3ef   : > { %p2155_p3 = por %p2154_p10, %p2153_p9 }
 0x3f1   : > { %p2156_p8 = pnand %p2155_p3, %p2149_p2 }
 0x3f3   : > { %2159 = shalt.err (!%p2156_p8)
}
 0x3f4   : > { %1909 = dma.vmem_to_hbm [thread:$0]  (%p2817_p1), %s2738_s11, 512, %s2736_s14, %s1568_s25  }
 0x3f5 PF: > { %s2818_s15 = sld [smem:[#allocation17_spill]]  ;;  %p1936_p7 = scmp.ge.s32.totalorder %s2206_s24, 2 }
 0x3f6   : > { %s1594_s29 = sand.u32 1, %s2194_s21  }
 0x3f7   : > { %s1595_s7 = scalar_lea.sflag [#allocation4], %s1594_s29 }
 0x3fb   : > { %p2819_p5 = scmp.ne.s32.totalorder %s2818_s15, 0 }
 0x3fd   : > { %p1926_p11 = pnand %p1936_p7, %p2819_p5 }
 0x3ff   : > { %2189 = dma.done.wait (!%p1926_p11), %s1595_s7, 512  }
 0x400   : > { %2191 = vsyncadd (!%p1926_p11), %s1595_s7, 4294966784  ;;  %s2820_s24 = sld [smem:[#allocation15_spill]]  ;;  %s2821_s27 = sld [smem:[#allocation16_spill]] }
 0x401   : > { %s2822_s21 = smov %s2198_s22  ;;  %s2823_s22 = smov %s2202_s23 }
 0x406   : > { %p21_p12 = scmp.ge.s32.totalorder %s2820_s24, 10   ;;  %s2824_s23 = smov %s2821_s27 }
 0x408   :  { %23 = sbr.rel (!%p21_p12) target bundleno = 9 (0x9), region = 101 }
 0x40f   :  { %1600 = vsyncpa [#allocation3], 1 }
 0x410   :  { %1602 = vsyncpa [#allocation3 + $0x1], 1 }
 0x411   :  { %1603 = vsyncpa [#allocation6], 1 }
 0x412   :  { %1604 = vsyncpa [#allocation9], 1 }
 0x413   :  { %1605 = vsyncpa [#allocation4], 1 }
 0x414   :  { %1607 = vsyncpa [#allocation4 + $0x1], 1 }

</bundles_post_ra>
